<compile_context>
chip_gen: v7x
topology: tpu7x:2x2x1
jax: 0.10.0
libtpu: 0.0.40
codegen_flags: <defaults>
</compile_context>

<pallas_src>
import functools

import jax
import jax.numpy as jnp
import numpy as np
from jax import lax
from jax.experimental import pallas as pl
from jax.experimental.pallas import tpu as pltpu


# ----------------------------- Pallas kernel -------------------------------


def _shift_rows(x, direction):
    """Shift rows (time axis) by one with a zero boundary, via XLU roll.

    direction=+1 -> row t holds x[t-1]; direction=-1 -> row t holds x[t+1].
    """
    T = x.shape[0]
    t = lax.broadcasted_iota(jnp.int32, (T, 1), 0)
    if direction > 0:
        shifted = pltpu.roll(x, shift=1, axis=0)        # row t <- x[t-1] (wrap)
        return jnp.where(t > 0, shifted, 0.0)           # zero the wrapped row 0
    shifted = pltpu.roll(x, shift=T - 1, axis=0)         # row t <- x[t+1] (wrap)
    return jnp.where(t < T - 1, shifted, 0.0)            # zero the wrapped row T-1


def _fpn_fused_kernel(lens_ref, *refs, num_levels, eps):
    """Whole-pyramid FPN1D forward for one batch element (grid over B).

    refs layout:
      inputs : for each level i: x_i (1,T,Cin) bf16,
                                 w_lat_i (Cin,C) bf16,
                                 packed_i (8,C) f32  [rows 0..2: w_dw, 3: gamma, 4: beta]
      outputs: feat_0 ... feat_{L-1}  (1,T,C) bf16
    lens_ref: (L, B) int32 valid lengths in SMEM (scalar prefetch).
    """
    L = num_levels
    in_refs = refs[: 3 * L]
    out_refs = refs[3 * L:]
    b = pl.program_id(0)

    comb_above = None  # combined lateral of the level above, (T_{i+1}, C) f32
    for i in range(L - 1, -1, -1):
        x_ref, wlat_ref, pk_ref = in_refs[3 * i: 3 * i + 3]
        feat_ref = out_refs[i]

        x = x_ref[0].astype(jnp.bfloat16)                 # (T, Cin) bf16
        T = x.shape[0]
        C = wlat_ref.shape[1]

        # ---- lateral 1x1 conv: bf16 MXU matmul, f32 accumulation -----------
        lat = jnp.dot(x, wlat_ref[...], preferred_element_type=jnp.float32)

        # (T, 1) validity column; jnp.where broadcasts across lanes.
        t_col = lax.broadcasted_iota(jnp.int32, (T, 1), 0)
        valid = t_col < lens_ref[i, b]
        lat = jnp.where(valid, lat, 0.0)                  # MaskedConv1D mask

        # ---- top-down: add nearest-2x upsample of the level above ----------
        if comb_above is None:
            comb = lat                                    # top level: no "up"
        else:
            Th = comb_above.shape[0]                      # == T // 2
            up = jnp.broadcast_to(comb_above[:, None, :], (Th, 2, C))
            comb = lat + up.reshape(T, C)                 # row duplication, no MXU

        # ---- depthwise conv1d: k=3, padding=1, groups=C, bias=False --------
        pk = pk_ref[...]                                  # (8, C) f32 packed params
        y = comb * pk[1:2, :]
        y = y + _shift_rows(comb, +1) * pk[0:1, :]
        y = y + _shift_rows(comb, -1) * pk[2:3, :]

        # ---- channel LayerNorm (over C), affine; mask fused into epilogue --
        mu = jnp.mean(y, axis=-1, keepdims=True)
        r = y - mu
        sigma = jnp.mean(r * r, axis=-1, keepdims=True)
        out = r * lax.rsqrt(sigma + eps)                  # rsqrt -> EUP slot
        out = out * pk[3:4, :] + pk[4:5, :]
        # MaskedConv1D would zero invalid rows before LN; LN of zeros is beta.
        out = jnp.where(valid, out, pk[4:5, :])
        feat_ref[0] = out.astype(feat_ref.dtype)

        comb_above = comb


# ------------------------------- FPN1D glue --------------------------------


def fpn1d_forward(inputs, lens, params, eps=1e-5, out_dtype=jnp.bfloat16):
    """FPN1D forward (with_ln=True, scale_factor=2.0, start=0, end=-1).

    inputs: list of (B, T_i, Cin_i) bf16/f32 arrays, T_i halving per level.
    lens:   (L, B) int32 valid lengths per level and batch element.
    Returns (fpn_feats, fpn_masks) matching the PyTorch module.
    """
    L = len(inputs)
    B = inputs[0].shape[0]
    C = params["w_lat"][0].shape[1]
    for i in range(L - 1):
        assert inputs[i].shape[1] == 2 * inputs[i + 1].shape[1]

    flat_inputs = []
    in_specs = []
    for i in range(L):
        T_i, Cin_i = inputs[i].shape[1], inputs[i].shape[2]
        w_lat = params["w_lat"][i].astype(jnp.bfloat16)
        # Pack depthwise weight / gamma / beta into one (8, C) f32 block.
        packed = jnp.zeros((8, C), jnp.float32)
        packed = packed.at[0:3].set(params["w_dw"][i].astype(jnp.float32))
        packed = packed.at[3].set(params["gamma"][i].reshape(C).astype(jnp.float32))
        packed = packed.at[4].set(params["beta"][i].reshape(C).astype(jnp.float32))
        flat_inputs += [inputs[i], w_lat, packed]
        in_specs += [
            pl.BlockSpec((1, T_i, Cin_i), lambda b, lens_ref: (b, 0, 0)),
            pl.BlockSpec((Cin_i, C), lambda b, lens_ref: (0, 0)),
            pl.BlockSpec((8, C), lambda b, lens_ref: (0, 0)),
        ]

    out_shape = tuple(
        jax.ShapeDtypeStruct((B, inputs[i].shape[1], C), out_dtype)
        for i in range(L))
    out_specs = [
        pl.BlockSpec((1, inputs[i].shape[1], C), lambda b, lens_ref: (b, 0, 0))
        for i in range(L)]

    kernel = functools.partial(_fpn_fused_kernel, num_levels=L, eps=eps)
    feats = pl.pallas_call(
        kernel,
        out_shape=out_shape,
        grid_spec=pltpu.PrefetchScalarGridSpec(
            num_scalar_prefetch=1,
            grid=(B,),
            in_specs=in_specs,
            out_specs=out_specs,
        ),
        compiler_params=pltpu.CompilerParams(
            dimension_semantics=("parallel",),
            vmem_limit_bytes=48 * 1024 * 1024),
    )(lens, *flat_inputs)

    # FPN1D passes the input masks straight through; rebuild them from lens.
    masks = tuple(
        jnp.arange(inputs[i].shape[1])[None, :, None] < lens[i][:, None, None]
        for i in range(L))
    return tuple(feats), masks


# --------------------------- pure-JAX reference ----------------------------


def reference_forward(inputs, masks, params, eps=1e-5):
    """f32 reference on the (already bf16-quantized) inputs / lateral weights."""
    L = len(inputs)
    lat = [jnp.einsum("btk,kn->btn",
                      inputs[i].astype(jnp.float32),
                      params["w_lat"][i].astype(jnp.float32)) * masks[i]
           for i in range(L)]
    for i in range(L - 1, 0, -1):
        lat[i - 1] = lat[i - 1] + jnp.repeat(lat[i], 2, axis=1)
    feats = []
    for i in range(L):
        x = lat[i]
        xp = jnp.pad(x, ((0, 0), (1, 1), (0, 0)))
        wd = params["w_dw"][i]
        y = (xp[:, :-2, :] * wd[0][None, None, :]
             + xp[:, 1:-1, :] * wd[1][None, None, :]
             + xp[:, 2:, :] * wd[2][None, None, :])
        y = y * masks[i]
        mu = jnp.mean(y, axis=-1, keepdims=True)
        r = y - mu
        sigma = jnp.mean(r * r, axis=-1, keepdims=True)
        out = r / jnp.sqrt(sigma + eps)
        feats.append(out * params["gamma"][i][None] + params["beta"][i][None])
    return feats


# ------------------------------- init & main -------------------------------


def init_params(key, in_channels, out_channel):
    # PyTorch shapes: lateral conv weight (Cout, Cin, 1) -> stored (Cin, Cout) bf16
    #                 depthwise conv weight (Cout, 1, 3) -> stored (3, Cout) f32
    #                 LayerNorm weight/bias (1, Cout, 1)  -> stored (1, Cout) f32
    params = {"w_lat": [], "w_dw": [], "gamma": [], "beta": []}
    for cin in in_channels:
        key, k1, k2, k3 = jax.random.split(key, 4)
        params["w_lat"].append(
            (jax.random.normal(k1, (cin, out_channel), jnp.float32)
             / np.sqrt(cin)).astype(jnp.bfloat16))
        params["w_dw"].append(
            jax.random.normal(k2, (3, out_channel), jnp.float32)
            / np.sqrt(3.0))
        params["gamma"].append(
            jnp.ones((1, out_channel), jnp.float32)
            + 0.1 * jax.random.normal(k3, (1, out_channel), jnp.float32))
        params["beta"].append(
            0.1 * jnp.arange(out_channel, dtype=jnp.float32)[None, :]
            / out_channel)
    return params


if __name__ == "__main__":
    key = jax.random.PRNGKey(0)
    in_channels = [32, 64, 96]     # per-pyramid-level input channels
    out_channel = 128              # multiple of 128 -> lane-dense output stores
    B = 2
    Ts = [32, 16, 8]               # T halves at each level (scale_factor=2)

    kp, kx = jax.random.split(key)
    params = init_params(kp, in_channels, out_channel)

    inputs, masks, lens_rows = [], [], []
    for cin, t in zip(in_channels, Ts):
        kx, kxi = jax.random.split(kx)
        x = jax.random.normal(kxi, (B, t, cin), jnp.float32)
        inputs.append(x.astype(jnp.bfloat16))            # bf16 end-to-end I/O
        valid = jnp.array([t, max(2, (3 * t) // 4)], dtype=jnp.int32)
        lens_rows.append(valid)
        m = (jnp.arange(t)[None, :] < valid[:, None]).astype(jnp.float32)
        masks.append(m[:, :, None])                       # (B, T, 1) reference mask
    lens = jnp.stack(lens_rows, axis=0)                   # (L, B) int32 -> SMEM

    feats, out_masks = fpn1d_forward(inputs, lens, params)
    feats = jax.block_until_ready(feats)

    ref_feats = reference_forward(inputs, masks, params)
    for f, r in zip(feats, ref_feats):
        np.testing.assert_allclose(np.asarray(f.astype(jnp.float32)),
                                   np.asarray(r),
                                   rtol=2e-2, atol=2e-2)

    print("KERNEL_OK")
</pallas_src>

<mosaic_0001>
module attributes {stable_mosaic.version = 11 : i64} {
  func.func @_fpn_fused_kernel(%arg0: i32, %arg1: memref<3x2xi32, #tpu.memory_space<smem>>, %arg2: memref<1x32x32xbf16, #tpu.memory_space<vmem>>, %arg3: memref<32x128xbf16, #tpu.memory_space<vmem>>, %arg4: memref<8x128xf32, #tpu.memory_space<vmem>>, %arg5: memref<1x16x64xbf16, #tpu.memory_space<vmem>>, %arg6: memref<64x128xbf16, #tpu.memory_space<vmem>>, %arg7: memref<8x128xf32, #tpu.memory_space<vmem>>, %arg8: memref<1x8x96xbf16, #tpu.memory_space<vmem>>, %arg9: memref<96x128xbf16, #tpu.memory_space<vmem>>, %arg10: memref<8x128xf32, #tpu.memory_space<vmem>>, %arg11: memref<1x32x128xbf16, #tpu.memory_space<vmem>>, %arg12: memref<1x16x128xbf16, #tpu.memory_space<vmem>>, %arg13: memref<1x8x128xbf16, #tpu.memory_space<vmem>>) attributes {dimension_semantics = [#tpu.dimension_semantics<parallel>], iteration_bounds = array<i64: 2>, scalar_prefetch = 1 : i64, scratch_operands = 0 : i64, tpu.core_type = #tpu.core_type<tc>, window_params = [{transform_indices = @transform_0, window_bounds = array<i64: 1, 32, 32>}, {pipeline_mode = #tpu.pipeline_mode<synchronous>, transform_indices = @transform_1, window_bounds = array<i64: 32, 128>}, {pipeline_mode = #tpu.pipeline_mode<synchronous>, transform_indices = @transform_2, window_bounds = array<i64: 8, 128>}, {transform_indices = @transform_3, window_bounds = array<i64: 1, 16, 64>}, {pipeline_mode = #tpu.pipeline_mode<synchronous>, transform_indices = @transform_4, window_bounds = array<i64: 64, 128>}, {pipeline_mode = #tpu.pipeline_mode<synchronous>, transform_indices = @transform_5, window_bounds = array<i64: 8, 128>}, {transform_indices = @transform_6, window_bounds = array<i64: 1, 8, 96>}, {pipeline_mode = #tpu.pipeline_mode<synchronous>, transform_indices = @transform_7, window_bounds = array<i64: 96, 128>}, {pipeline_mode = #tpu.pipeline_mode<synchronous>, transform_indices = @transform_8, window_bounds = array<i64: 8, 128>}, {transform_indices = @transform_9, window_bounds = array<i64: 1, 32, 128>}, {transform_indices = @transform_10, window_bounds = array<i64: 1, 16, 128>}, {transform_indices = @transform_11, window_bounds = array<i64: 1, 8, 128>}]} {
    %c0 = arith.constant 0 : index
    %c0_0 = arith.constant 0 : index
    %c0_1 = arith.constant 0 : index
    %0 = vector.load %arg8[%c0, %c0_0, %c0_1] : memref<1x8x96xbf16, #tpu.memory_space<vmem>>, vector<1x8x96xbf16>
    %1 = vector.shape_cast %0 : vector<1x8x96xbf16> to vector<8x96xbf16>
    %c0_2 = arith.constant 0 : index
    %c0_3 = arith.constant 0 : index
    %2 = vector.load %arg9[%c0_2, %c0_3] : memref<96x128xbf16, #tpu.memory_space<vmem>>, vector<96x128xbf16>
    %cst = arith.constant dense<0.000000e+00> : vector<8x128xf32>
    %3 = tpu.matmul %1, %2, %cst {dimension_numbers = #tpu.dot_dimension_numbers<[1], [0], [0], [1], [0, 0, 1, 1], [], []>} : vector<8x96xbf16>, vector<96x128xbf16>, vector<8x128xf32> -> vector<8x128xf32>
    %4 = tpu.iota {dimensions = array<i32: 0>} : vector<8x1xi32>
    %c2 = arith.constant 2 : index
    %5 = arith.index_cast %arg0 : i32 to index
    %6 = memref.load %arg1[%c2, %5] : memref<3x2xi32, #tpu.memory_space<smem>>
    %7 = vector.broadcast %6 : i32 to vector<8x1xi32>
    %8 = arith.cmpi slt, %4, %7 : vector<8x1xi32>
    %cst_4 = arith.constant 0.000000e+00 : f32
    %9 = vector.shape_cast %8 : vector<8x1xi1> to vector<8x1xi1>
    %10 = vector.broadcast %9 : vector<8x1xi1> to vector<8x128xi1>
    %11 = vector.broadcast %cst_4 : f32 to vector<8x128xf32>
    %12 = arith.select %10, %3, %11 : vector<8x128xi1>, vector<8x128xf32>
    %c0_5 = arith.constant 0 : index
    %c0_6 = arith.constant 0 : index
    %13 = vector.load %arg10[%c0_5, %c0_6] : memref<8x128xf32, #tpu.memory_space<vmem>>, vector<8x128xf32>
    %14 = vector.extract_strided_slice %13 {offsets = [1, 0], sizes = [1, 128], strides = [1, 1]} : vector<8x128xf32> to vector<1x128xf32>
    %15 = vector.broadcast %14 : vector<1x128xf32> to vector<8x128xf32>
    %16 = arith.mulf %12, %15 : vector<8x128xf32>
    %17 = tpu.iota {dimensions = array<i32: 0>} : vector<8x1xi32>
    %c1_i32 = arith.constant 1 : i32
    %18 = tpu.dynamic_rotate %12 by %c1_i32 dim 0 : vector<8x128xf32>, i32 -> vector<8x128xf32>
    %c0_i32 = arith.constant 0 : i32
    %19 = vector.broadcast %c0_i32 : i32 to vector<8x1xi32>
    %20 = arith.cmpi sgt, %17, %19 : vector<8x1xi32>
    %cst_7 = arith.constant 0.000000e+00 : f32
    %21 = vector.shape_cast %20 : vector<8x1xi1> to vector<8x1xi1>
    %22 = vector.broadcast %21 : vector<8x1xi1> to vector<8x128xi1>
    %23 = vector.broadcast %cst_7 : f32 to vector<8x128xf32>
    %24 = arith.select %22, %18, %23 : vector<8x128xi1>, vector<8x128xf32>
    %25 = vector.extract_strided_slice %13 {offsets = [0, 0], sizes = [1, 128], strides = [1, 1]} : vector<8x128xf32> to vector<1x128xf32>
    %26 = vector.broadcast %25 : vector<1x128xf32> to vector<8x128xf32>
    %27 = arith.mulf %24, %26 : vector<8x128xf32>
    %28 = arith.addf %16, %27 : vector<8x128xf32>
    %29 = tpu.iota {dimensions = array<i32: 0>} : vector<8x1xi32>
    %c7_i32 = arith.constant 7 : i32
    %30 = tpu.dynamic_rotate %12 by %c7_i32 dim 0 : vector<8x128xf32>, i32 -> vector<8x128xf32>
    %c7_i32_8 = arith.constant 7 : i32
    %31 = vector.broadcast %c7_i32_8 : i32 to vector<8x1xi32>
    %32 = arith.cmpi slt, %29, %31 : vector<8x1xi32>
    %cst_9 = arith.constant 0.000000e+00 : f32
    %33 = vector.shape_cast %32 : vector<8x1xi1> to vector<8x1xi1>
    %34 = vector.broadcast %33 : vector<8x1xi1> to vector<8x128xi1>
    %35 = vector.broadcast %cst_9 : f32 to vector<8x128xf32>
    %36 = arith.select %34, %30, %35 : vector<8x128xi1>, vector<8x128xf32>
    %37 = vector.extract_strided_slice %13 {offsets = [2, 0], sizes = [1, 128], strides = [1, 1]} : vector<8x128xf32> to vector<1x128xf32>
    %38 = vector.broadcast %37 : vector<1x128xf32> to vector<8x128xf32>
    %39 = arith.mulf %36, %38 : vector<8x128xf32>
    %40 = arith.addf %28, %39 : vector<8x128xf32>
    %cst_10 = arith.constant dense<0.000000e+00> : vector<8xf32>
    %41 = vector.multi_reduction <add>, %40, %cst_10 [1] : vector<8x128xf32> to vector<8xf32>
    %42 = vector.shape_cast %41 : vector<8xf32> to vector<8x1xf32>
    %cst_11 = arith.constant 1.280000e+02 : f32
    %43 = vector.broadcast %cst_11 : f32 to vector<8x1xf32>
    %44 = arith.divf %42, %43 : vector<8x1xf32>
    %45 = vector.broadcast %44 : vector<8x1xf32> to vector<8x128xf32>
    %46 = arith.subf %40, %45 : vector<8x128xf32>
    %47 = arith.mulf %46, %46 : vector<8x128xf32>
    %cst_12 = arith.constant dense<0.000000e+00> : vector<8xf32>
    %48 = vector.multi_reduction <add>, %47, %cst_12 [1] : vector<8x128xf32> to vector<8xf32>
    %49 = vector.shape_cast %48 : vector<8xf32> to vector<8x1xf32>
    %cst_13 = arith.constant 1.280000e+02 : f32
    %50 = vector.broadcast %cst_13 : f32 to vector<8x1xf32>
    %51 = arith.divf %49, %50 : vector<8x1xf32>
    %cst_14 = arith.constant 9.99999974E-6 : f32
    %52 = vector.broadcast %cst_14 : f32 to vector<8x1xf32>
    %53 = arith.addf %51, %52 : vector<8x1xf32>
    %54 = math.rsqrt %53 : vector<8x1xf32>
    %55 = vector.broadcast %54 : vector<8x1xf32> to vector<8x128xf32>
    %56 = arith.mulf %46, %55 : vector<8x128xf32>
    %57 = vector.extract_strided_slice %13 {offsets = [3, 0], sizes = [1, 128], strides = [1, 1]} : vector<8x128xf32> to vector<1x128xf32>
    %58 = vector.broadcast %57 : vector<1x128xf32> to vector<8x128xf32>
    %59 = arith.mulf %56, %58 : vector<8x128xf32>
    %60 = vector.extract_strided_slice %13 {offsets = [4, 0], sizes = [1, 128], strides = [1, 1]} : vector<8x128xf32> to vector<1x128xf32>
    %61 = vector.broadcast %60 : vector<1x128xf32> to vector<8x128xf32>
    %62 = arith.addf %59, %61 : vector<8x128xf32>
    %63 = vector.extract_strided_slice %13 {offsets = [4, 0], sizes = [1, 128], strides = [1, 1]} : vector<8x128xf32> to vector<1x128xf32>
    %64 = vector.shape_cast %8 : vector<8x1xi1> to vector<8x1xi1>
    %65 = vector.broadcast %64 : vector<8x1xi1> to vector<8x128xi1>
    %66 = vector.shape_cast %63 : vector<1x128xf32> to vector<1x128xf32>
    %67 = vector.broadcast %66 : vector<1x128xf32> to vector<8x128xf32>
    %68 = arith.select %65, %62, %67 : vector<8x128xi1>, vector<8x128xf32>
    %69 = arith.truncf %68 : vector<8x128xf32> to vector<8x128xbf16>
    %c0_15 = arith.constant 0 : index
    %c0_16 = arith.constant 0 : index
    %c0_17 = arith.constant 0 : index
    %70 = vector.load %arg13[%c0_15, %c0_16, %c0_17] : memref<1x8x128xbf16, #tpu.memory_space<vmem>>, vector<1x8x128xbf16>
    %71 = vector.shape_cast %70 : vector<1x8x128xbf16> to vector<8x128xbf16>
    %72 = vector.shape_cast %69 : vector<8x128xbf16> to vector<1x8x128xbf16>
    tpu.vector_store %arg13[%c0_15, %c0_16, %c0_17], %72 {strides = array<i32>} : memref<1x8x128xbf16, #tpu.memory_space<vmem>>, vector<1x8x128xbf16>,
    %c0_18 = arith.constant 0 : index
    %c0_19 = arith.constant 0 : index
    %c0_20 = arith.constant 0 : index
    %73 = vector.load %arg5[%c0_18, %c0_19, %c0_20] : memref<1x16x64xbf16, #tpu.memory_space<vmem>>, vector<1x16x64xbf16>
    %74 = vector.shape_cast %73 : vector<1x16x64xbf16> to vector<16x64xbf16>
    %c0_21 = arith.constant 0 : index
    %c0_22 = arith.constant 0 : index
    %75 = vector.load %arg6[%c0_21, %c0_22] : memref<64x128xbf16, #tpu.memory_space<vmem>>, vector<64x128xbf16>
    %cst_23 = arith.constant dense<0.000000e+00> : vector<16x128xf32>
    %76 = tpu.matmul %74, %75, %cst_23 {dimension_numbers = #tpu.dot_dimension_numbers<[1], [0], [0], [1], [0, 0, 1, 1], [], []>} : vector<16x64xbf16>, vector<64x128xbf16>, vector<16x128xf32> -> vector<16x128xf32>
    %77 = tpu.iota {dimensions = array<i32: 0>} : vector<16x1xi32>
    %c1 = arith.constant 1 : index
    %78 = arith.index_cast %arg0 : i32 to index
    %79 = memref.load %arg1[%c1, %78] : memref<3x2xi32, #tpu.memory_space<smem>>
    %80 = vector.broadcast %79 : i32 to vector<16x1xi32>
    %81 = arith.cmpi slt, %77, %80 : vector<16x1xi32>
    %cst_24 = arith.constant 0.000000e+00 : f32
    %82 = vector.shape_cast %81 : vector<16x1xi1> to vector<16x1xi1>
    %83 = vector.broadcast %82 : vector<16x1xi1> to vector<16x128xi1>
    %84 = vector.broadcast %cst_24 : f32 to vector<16x128xf32>
    %85 = arith.select %83, %76, %84 : vector<16x128xi1>, vector<16x128xf32>
    %86 = vector.shape_cast %12 : vector<8x128xf32> to vector<8x1x128xf32>
    %87 = vector.shape_cast %86 : vector<8x1x128xf32> to vector<8x1x128xf32>
    %88 = vector.broadcast %87 : vector<8x1x128xf32> to vector<8x2x128xf32>
    %89 = vector.shape_cast %88 : vector<8x2x128xf32> to vector<16x128xf32>
    %90 = arith.addf %85, %89 : vector<16x128xf32>
    %c0_25 = arith.constant 0 : index
    %c0_26 = arith.constant 0 : index
    %91 = vector.load %arg7[%c0_25, %c0_26] : memref<8x128xf32, #tpu.memory_space<vmem>>, vector<8x128xf32>
    %92 = vector.extract_strided_slice %91 {offsets = [1, 0], sizes = [1, 128], strides = [1, 1]} : vector<8x128xf32> to vector<1x128xf32>
    %93 = vector.broadcast %92 : vector<1x128xf32> to vector<16x128xf32>
    %94 = arith.mulf %90, %93 : vector<16x128xf32>
    %95 = tpu.iota {dimensions = array<i32: 0>} : vector<16x1xi32>
    %c1_i32_27 = arith.constant 1 : i32
    %96 = tpu.dynamic_rotate %90 by %c1_i32_27 dim 0 : vector<16x128xf32>, i32 -> vector<16x128xf32>
    %c0_i32_28 = arith.constant 0 : i32
    %97 = vector.broadcast %c0_i32_28 : i32 to vector<16x1xi32>
    %98 = arith.cmpi sgt, %95, %97 : vector<16x1xi32>
    %cst_29 = arith.constant 0.000000e+00 : f32
    %99 = vector.shape_cast %98 : vector<16x1xi1> to vector<16x1xi1>
    %100 = vector.broadcast %99 : vector<16x1xi1> to vector<16x128xi1>
    %101 = vector.broadcast %cst_29 : f32 to vector<16x128xf32>
    %102 = arith.select %100, %96, %101 : vector<16x128xi1>, vector<16x128xf32>
    %103 = vector.extract_strided_slice %91 {offsets = [0, 0], sizes = [1, 128], strides = [1, 1]} : vector<8x128xf32> to vector<1x128xf32>
    %104 = vector.broadcast %103 : vector<1x128xf32> to vector<16x128xf32>
    %105 = arith.mulf %102, %104 : vector<16x128xf32>
    %106 = arith.addf %94, %105 : vector<16x128xf32>
    %107 = tpu.iota {dimensions = array<i32: 0>} : vector<16x1xi32>
    %c15_i32 = arith.constant 15 : i32
    %108 = tpu.dynamic_rotate %90 by %c15_i32 dim 0 : vector<16x128xf32>, i32 -> vector<16x128xf32>
    %c15_i32_30 = arith.constant 15 : i32
    %109 = vector.broadcast %c15_i32_30 : i32 to vector<16x1xi32>
    %110 = arith.cmpi slt, %107, %109 : vector<16x1xi32>
    %cst_31 = arith.constant 0.000000e+00 : f32
    %111 = vector.shape_cast %110 : vector<16x1xi1> to vector<16x1xi1>
    %112 = vector.broadcast %111 : vector<16x1xi1> to vector<16x128xi1>
    %113 = vector.broadcast %cst_31 : f32 to vector<16x128xf32>
    %114 = arith.select %112, %108, %113 : vector<16x128xi1>, vector<16x128xf32>
    %115 = vector.extract_strided_slice %91 {offsets = [2, 0], sizes = [1, 128], strides = [1, 1]} : vector<8x128xf32> to vector<1x128xf32>
    %116 = vector.broadcast %115 : vector<1x128xf32> to vector<16x128xf32>
    %117 = arith.mulf %114, %116 : vector<16x128xf32>
    %118 = arith.addf %106, %117 : vector<16x128xf32>
    %cst_32 = arith.constant dense<0.000000e+00> : vector<16xf32>
    %119 = vector.multi_reduction <add>, %118, %cst_32 [1] : vector<16x128xf32> to vector<16xf32>
    %120 = vector.shape_cast %119 : vector<16xf32> to vector<16x1xf32>
    %cst_33 = arith.constant 1.280000e+02 : f32
    %121 = vector.broadcast %cst_33 : f32 to vector<16x1xf32>
    %122 = arith.divf %120, %121 : vector<16x1xf32>
    %123 = vector.broadcast %122 : vector<16x1xf32> to vector<16x128xf32>
    %124 = arith.subf %118, %123 : vector<16x128xf32>
    %125 = arith.mulf %124, %124 : vector<16x128xf32>
    %cst_34 = arith.constant dense<0.000000e+00> : vector<16xf32>
    %126 = vector.multi_reduction <add>, %125, %cst_34 [1] : vector<16x128xf32> to vector<16xf32>
    %127 = vector.shape_cast %126 : vector<16xf32> to vector<16x1xf32>
    %cst_35 = arith.constant 1.280000e+02 : f32
    %128 = vector.broadcast %cst_35 : f32 to vector<16x1xf32>
    %129 = arith.divf %127, %128 : vector<16x1xf32>
    %cst_36 = arith.constant 9.99999974E-6 : f32
    %130 = vector.broadcast %cst_36 : f32 to vector<16x1xf32>
    %131 = arith.addf %129, %130 : vector<16x1xf32>
    %132 = math.rsqrt %131 : vector<16x1xf32>
    %133 = vector.broadcast %132 : vector<16x1xf32> to vector<16x128xf32>
    %134 = arith.mulf %124, %133 : vector<16x128xf32>
    %135 = vector.extract_strided_slice %91 {offsets = [3, 0], sizes = [1, 128], strides = [1, 1]} : vector<8x128xf32> to vector<1x128xf32>
    %136 = vector.broadcast %135 : vector<1x128xf32> to vector<16x128xf32>
    %137 = arith.mulf %134, %136 : vector<16x128xf32>
    %138 = vector.extract_strided_slice %91 {offsets = [4, 0], sizes = [1, 128], strides = [1, 1]} : vector<8x128xf32> to vector<1x128xf32>
    %139 = vector.broadcast %138 : vector<1x128xf32> to vector<16x128xf32>
    %140 = arith.addf %137, %139 : vector<16x128xf32>
    %141 = vector.extract_strided_slice %91 {offsets = [4, 0], sizes = [1, 128], strides = [1, 1]} : vector<8x128xf32> to vector<1x128xf32>
    %142 = vector.shape_cast %81 : vector<16x1xi1> to vector<16x1xi1>
    %143 = vector.broadcast %142 : vector<16x1xi1> to vector<16x128xi1>
    %144 = vector.shape_cast %141 : vector<1x128xf32> to vector<1x128xf32>
    %145 = vector.broadcast %144 : vector<1x128xf32> to vector<16x128xf32>
    %146 = arith.select %143, %140, %145 : vector<16x128xi1>, vector<16x128xf32>
    %147 = arith.truncf %146 : vector<16x128xf32> to vector<16x128xbf16>
    %c0_37 = arith.constant 0 : index
    %c0_38 = arith.constant 0 : index
    %c0_39 = arith.constant 0 : index
    %148 = vector.load %arg12[%c0_37, %c0_38, %c0_39] : memref<1x16x128xbf16, #tpu.memory_space<vmem>>, vector<1x16x128xbf16>
    %149 = vector.shape_cast %148 : vector<1x16x128xbf16> to vector<16x128xbf16>
    %150 = vector.shape_cast %147 : vector<16x128xbf16> to vector<1x16x128xbf16>
    tpu.vector_store %arg12[%c0_37, %c0_38, %c0_39], %150 {strides = array<i32>} : memref<1x16x128xbf16, #tpu.memory_space<vmem>>, vector<1x16x128xbf16>,
    %c0_40 = arith.constant 0 : index
    %c0_41 = arith.constant 0 : index
    %c0_42 = arith.constant 0 : index
    %151 = vector.load %arg2[%c0_40, %c0_41, %c0_42] : memref<1x32x32xbf16, #tpu.memory_space<vmem>>, vector<1x32x32xbf16>
    %152 = vector.shape_cast %151 : vector<1x32x32xbf16> to vector<32x32xbf16>
    %c0_43 = arith.constant 0 : index
    %c0_44 = arith.constant 0 : index
    %153 = vector.load %arg3[%c0_43, %c0_44] : memref<32x128xbf16, #tpu.memory_space<vmem>>, vector<32x128xbf16>
    %cst_45 = arith.constant dense<0.000000e+00> : vector<32x128xf32>
    %154 = tpu.matmul %152, %153, %cst_45 {dimension_numbers = #tpu.dot_dimension_numbers<[1], [0], [0], [1], [0, 0, 1, 1], [], []>} : vector<32x32xbf16>, vector<32x128xbf16>, vector<32x128xf32> -> vector<32x128xf32>
    %155 = tpu.iota {dimensions = array<i32: 0>} : vector<32x1xi32>
    %c0_46 = arith.constant 0 : index
    %156 = arith.index_cast %arg0 : i32 to index
    %157 = memref.load %arg1[%c0_46, %156] : memref<3x2xi32, #tpu.memory_space<smem>>
    %158 = vector.broadcast %157 : i32 to vector<32x1xi32>
    %159 = arith.cmpi slt, %155, %158 : vector<32x1xi32>
    %cst_47 = arith.constant 0.000000e+00 : f32
    %160 = vector.shape_cast %159 : vector<32x1xi1> to vector<32x1xi1>
    %161 = vector.broadcast %160 : vector<32x1xi1> to vector<32x128xi1>
    %162 = vector.broadcast %cst_47 : f32 to vector<32x128xf32>
    %163 = arith.select %161, %154, %162 : vector<32x128xi1>, vector<32x128xf32>
    %164 = vector.shape_cast %90 : vector<16x128xf32> to vector<16x1x128xf32>
    %165 = vector.shape_cast %164 : vector<16x1x128xf32> to vector<16x1x128xf32>
    %166 = vector.broadcast %165 : vector<16x1x128xf32> to vector<16x2x128xf32>
    %167 = vector.shape_cast %166 : vector<16x2x128xf32> to vector<32x128xf32>
    %168 = arith.addf %163, %167 : vector<32x128xf32>
    %c0_48 = arith.constant 0 : index
    %c0_49 = arith.constant 0 : index
    %169 = vector.load %arg4[%c0_48, %c0_49] : memref<8x128xf32, #tpu.memory_space<vmem>>, vector<8x128xf32>
    %170 = vector.extract_strided_slice %169 {offsets = [1, 0], sizes = [1, 128], strides = [1, 1]} : vector<8x128xf32> to vector<1x128xf32>
    %171 = vector.broadcast %170 : vector<1x128xf32> to vector<32x128xf32>
    %172 = arith.mulf %168, %171 : vector<32x128xf32>
    %173 = tpu.iota {dimensions = array<i32: 0>} : vector<32x1xi32>
    %c1_i32_50 = arith.constant 1 : i32
    %174 = tpu.dynamic_rotate %168 by %c1_i32_50 dim 0 : vector<32x128xf32>, i32 -> vector<32x128xf32>
    %c0_i32_51 = arith.constant 0 : i32
    %175 = vector.broadcast %c0_i32_51 : i32 to vector<32x1xi32>
    %176 = arith.cmpi sgt, %173, %175 : vector<32x1xi32>
    %cst_52 = arith.constant 0.000000e+00 : f32
    %177 = vector.shape_cast %176 : vector<32x1xi1> to vector<32x1xi1>
    %178 = vector.broadcast %177 : vector<32x1xi1> to vector<32x128xi1>
    %179 = vector.broadcast %cst_52 : f32 to vector<32x128xf32>
    %180 = arith.select %178, %174, %179 : vector<32x128xi1>, vector<32x128xf32>
    %181 = vector.extract_strided_slice %169 {offsets = [0, 0], sizes = [1, 128], strides = [1, 1]} : vector<8x128xf32> to vector<1x128xf32>
    %182 = vector.broadcast %181 : vector<1x128xf32> to vector<32x128xf32>
    %183 = arith.mulf %180, %182 : vector<32x128xf32>
    %184 = arith.addf %172, %183 : vector<32x128xf32>
    %185 = tpu.iota {dimensions = array<i32: 0>} : vector<32x1xi32>
    %c31_i32 = arith.constant 31 : i32
    %186 = tpu.dynamic_rotate %168 by %c31_i32 dim 0 : vector<32x128xf32>, i32 -> vector<32x128xf32>
    %c31_i32_53 = arith.constant 31 : i32
    %187 = vector.broadcast %c31_i32_53 : i32 to vector<32x1xi32>
    %188 = arith.cmpi slt, %185, %187 : vector<32x1xi32>
    %cst_54 = arith.constant 0.000000e+00 : f32
    %189 = vector.shape_cast %188 : vector<32x1xi1> to vector<32x1xi1>
    %190 = vector.broadcast %189 : vector<32x1xi1> to vector<32x128xi1>
    %191 = vector.broadcast %cst_54 : f32 to vector<32x128xf32>
    %192 = arith.select %190, %186, %191 : vector<32x128xi1>, vector<32x128xf32>
    %193 = vector.extract_strided_slice %169 {offsets = [2, 0], sizes = [1, 128], strides = [1, 1]} : vector<8x128xf32> to vector<1x128xf32>
    %194 = vector.broadcast %193 : vector<1x128xf32> to vector<32x128xf32>
    %195 = arith.mulf %192, %194 : vector<32x128xf32>
    %196 = arith.addf %184, %195 : vector<32x128xf32>
    %cst_55 = arith.constant dense<0.000000e+00> : vector<32xf32>
    %197 = vector.multi_reduction <add>, %196, %cst_55 [1] : vector<32x128xf32> to vector<32xf32>
    %198 = vector.shape_cast %197 : vector<32xf32> to vector<32x1xf32>
    %cst_56 = arith.constant 1.280000e+02 : f32
    %199 = vector.broadcast %cst_56 : f32 to vector<32x1xf32>
    %200 = arith.divf %198, %199 : vector<32x1xf32>
    %201 = vector.broadcast %200 : vector<32x1xf32> to vector<32x128xf32>
    %202 = arith.subf %196, %201 : vector<32x128xf32>
    %203 = arith.mulf %202, %202 : vector<32x128xf32>
    %cst_57 = arith.constant dense<0.000000e+00> : vector<32xf32>
    %204 = vector.multi_reduction <add>, %203, %cst_57 [1] : vector<32x128xf32> to vector<32xf32>
    %205 = vector.shape_cast %204 : vector<32xf32> to vector<32x1xf32>
    %cst_58 = arith.constant 1.280000e+02 : f32
    %206 = vector.broadcast %cst_58 : f32 to vector<32x1xf32>
    %207 = arith.divf %205, %206 : vector<32x1xf32>
    %cst_59 = arith.constant 9.99999974E-6 : f32
    %208 = vector.broadcast %cst_59 : f32 to vector<32x1xf32>
    %209 = arith.addf %207, %208 : vector<32x1xf32>
    %210 = math.rsqrt %209 : vector<32x1xf32>
    %211 = vector.broadcast %210 : vector<32x1xf32> to vector<32x128xf32>
    %212 = arith.mulf %202, %211 : vector<32x128xf32>
    %213 = vector.extract_strided_slice %169 {offsets = [3, 0], sizes = [1, 128], strides = [1, 1]} : vector<8x128xf32> to vector<1x128xf32>
    %214 = vector.broadcast %213 : vector<1x128xf32> to vector<32x128xf32>
    %215 = arith.mulf %212, %214 : vector<32x128xf32>
    %216 = vector.extract_strided_slice %169 {offsets = [4, 0], sizes = [1, 128], strides = [1, 1]} : vector<8x128xf32> to vector<1x128xf32>
    %217 = vector.broadcast %216 : vector<1x128xf32> to vector<32x128xf32>
    %218 = arith.addf %215, %217 : vector<32x128xf32>
    %219 = vector.extract_strided_slice %169 {offsets = [4, 0], sizes = [1, 128], strides = [1, 1]} : vector<8x128xf32> to vector<1x128xf32>
    %220 = vector.shape_cast %159 : vector<32x1xi1> to vector<32x1xi1>
    %221 = vector.broadcast %220 : vector<32x1xi1> to vector<32x128xi1>
    %222 = vector.shape_cast %219 : vector<1x128xf32> to vector<1x128xf32>
    %223 = vector.broadcast %222 : vector<1x128xf32> to vector<32x128xf32>
    %224 = arith.select %221, %218, %223 : vector<32x128xi1>, vector<32x128xf32>
    %225 = arith.truncf %224 : vector<32x128xf32> to vector<32x128xbf16>
    %c0_60 = arith.constant 0 : index
    %c0_61 = arith.constant 0 : index
    %c0_62 = arith.constant 0 : index
    %226 = vector.load %arg11[%c0_60, %c0_61, %c0_62] : memref<1x32x128xbf16, #tpu.memory_space<vmem>>, vector<1x32x128xbf16>
    %227 = vector.shape_cast %226 : vector<1x32x128xbf16> to vector<32x128xbf16>
    %228 = vector.shape_cast %225 : vector<32x128xbf16> to vector<1x32x128xbf16>
    tpu.vector_store %arg11[%c0_60, %c0_61, %c0_62], %228 {strides = array<i32>} : memref<1x32x128xbf16, #tpu.memory_space<vmem>>, vector<1x32x128xbf16>,
    return
  }
  func.func @transform_0(%arg0: i32, %arg1: memref<3x2xi32, #tpu.memory_space<smem>>) -> (i32, i32, i32) {
    %c0_i32 = arith.constant 0 : i32
    %c0_i32_0 = arith.constant 0 : i32
    %c0_i32_1 = arith.constant 0 : i32
    return %arg0, %c0_i32, %c0_i32_0 : i32, i32, i32
  }
  func.func @transform_1(%arg0: i32, %arg1: memref<3x2xi32, #tpu.memory_space<smem>>) -> (i32, i32) {
    %c0_i32 = arith.constant 0 : i32
    %c0_i32_0 = arith.constant 0 : i32
    %c0_i32_1 = arith.constant 0 : i32
    return %c0_i32, %c0_i32_0 : i32, i32
  }
  func.func @transform_2(%arg0: i32, %arg1: memref<3x2xi32, #tpu.memory_space<smem>>) -> (i32, i32) {
    %c0_i32 = arith.constant 0 : i32
    %c0_i32_0 = arith.constant 0 : i32
    %c0_i32_1 = arith.constant 0 : i32
    return %c0_i32, %c0_i32_0 : i32, i32
  }
  func.func @transform_3(%arg0: i32, %arg1: memref<3x2xi32, #tpu.memory_space<smem>>) -> (i32, i32, i32) {
    %c0_i32 = arith.constant 0 : i32
    %c0_i32_0 = arith.constant 0 : i32
    %c0_i32_1 = arith.constant 0 : i32
    return %arg0, %c0_i32, %c0_i32_0 : i32, i32, i32
  }
  func.func @transform_4(%arg0: i32, %arg1: memref<3x2xi32, #tpu.memory_space<smem>>) -> (i32, i32) {
    %c0_i32 = arith.constant 0 : i32
    %c0_i32_0 = arith.constant 0 : i32
    %c0_i32_1 = arith.constant 0 : i32
    return %c0_i32, %c0_i32_0 : i32, i32
  }
  func.func @transform_5(%arg0: i32, %arg1: memref<3x2xi32, #tpu.memory_space<smem>>) -> (i32, i32) {
    %c0_i32 = arith.constant 0 : i32
    %c0_i32_0 = arith.constant 0 : i32
    %c0_i32_1 = arith.constant 0 : i32
    return %c0_i32, %c0_i32_0 : i32, i32
  }
  func.func @transform_6(%arg0: i32, %arg1: memref<3x2xi32, #tpu.memory_space<smem>>) -> (i32, i32, i32) {
    %c0_i32 = arith.constant 0 : i32
    %c0_i32_0 = arith.constant 0 : i32
    %c0_i32_1 = arith.constant 0 : i32
    return %arg0, %c0_i32, %c0_i32_0 : i32, i32, i32
  }
  func.func @transform_7(%arg0: i32, %arg1: memref<3x2xi32, #tpu.memory_space<smem>>) -> (i32, i32) {
    %c0_i32 = arith.constant 0 : i32
    %c0_i32_0 = arith.constant 0 : i32
    %c0_i32_1 = arith.constant 0 : i32
    return %c0_i32, %c0_i32_0 : i32, i32
  }
  func.func @transform_8(%arg0: i32, %arg1: memref<3x2xi32, #tpu.memory_space<smem>>) -> (i32, i32) {
    %c0_i32 = arith.constant 0 : i32
    %c0_i32_0 = arith.constant 0 : i32
    %c0_i32_1 = arith.constant 0 : i32
    return %c0_i32, %c0_i32_0 : i32, i32
  }
  func.func @transform_9(%arg0: i32, %arg1: memref<3x2xi32, #tpu.memory_space<smem>>) -> (i32, i32, i32) {
    %c0_i32 = arith.constant 0 : i32
    %c0_i32_0 = arith.constant 0 : i32
    %c0_i32_1 = arith.constant 0 : i32
    return %arg0, %c0_i32, %c0_i32_0 : i32, i32, i32
  }
  func.func @transform_10(%arg0: i32, %arg1: memref<3x2xi32, #tpu.memory_space<smem>>) -> (i32, i32, i32) {
    %c0_i32 = arith.constant 0 : i32
    %c0_i32_0 = arith.constant 0 : i32
    %c0_i32_1 = arith.constant 0 : i32
    return %arg0, %c0_i32, %c0_i32_0 : i32, i32, i32
  }
  func.func @transform_11(%arg0: i32, %arg1: memref<3x2xi32, #tpu.memory_space<smem>>) -> (i32, i32, i32) {
    %c0_i32 = arith.constant 0 : i32
    %c0_i32_0 = arith.constant 0 : i32
    %c0_i32_1 = arith.constant 0 : i32
    return %arg0, %c0_i32, %c0_i32_0 : i32, i32, i32
  }
}

</mosaic_0001>

<bundles_post_ra>
// kernel: tpu_custom_call.1
= control target key start
LH: loop header
LB: loop body
LE: loop exit
PB: predicated region body
PF: predicated region fallthrough
CT: control target
= control target key end

     0   :  { %s3082_s0 = inlined_call_operand.vmem [shape: s32[3,2], index: 0, kind: input, shape index: {}]   ;;  %s3083_s1 = inlined_call_operand.hbm [shape: bf16[2,32,32], index: 1, kind: input, shape index: {}]   ;;  %s3084_s2 = inlined_call_operand.hbm [shape: bf16[32,128], index: 2, kind: input, shape index: {}]   ;;  %s3085_s3 = inlined_call_operand.hbm [shape: f32[8,128], index: 3, kind: input, shape index: {}]   ;;  %s3086_s4 = inlined_call_operand.vmem [shape: bf16[2,16,64], index: 4, kind: input, shape index: {}]   ;;  %s3087_s5 = inlined_call_operand.hbm [shape: bf16[64,128], index: 5, kind: input, shape index: {}]   ;;  %s3088_s6 = inlined_call_operand.vmem [shape: f32[8,128], index: 6, kind: input, shape index: {}]   ;;  %s3089_s7 = inlined_call_operand.vmem [shape: bf16[2,8,96], index: 7, kind: input, shape index: {}]   ;;  %s3090_s8 = inlined_call_operand.hbm [shape: bf16[96,128], index: 8, kind: input, shape index: {}]   ;;  %s3091_s9 = inlined_call_operand.vmem [shape: f32[8,128], index: 9, kind: input, shape index: {}]   ;;  %s3092_s10 = inlined_call_operand.hbm [shape: bf16[2,32,128], index: 10, kind: output, shape index: {0}]   ;;  %s3093_s11 = inlined_call_operand.hbm [shape: bf16[2,16,128], index: 11, kind: output, shape index: {1}]   ;;  %s3094_s12 = inlined_call_operand.hbm [shape: bf16[2,8,128], index: 12, kind: output, shape index: {2}]  }
   0x1   :  { %3105 = sst [smem:[#allocation25_spill]] %s3083_s1  ;;  %s18_s23 = sshll.u32 %s3082_s0, 4  ;;  %s19_s23 = int_to_ptr.vmem [resolvable:$true] %s18_s23 }
   0x2   :  { %3106 = sst [smem:[#allocation26_spill]] %s3092_s10  ;;  %s2024_s24 = scalar_lea.vmem %s19_s23, 64 }
   0x3   :  { %3107 = sst [smem:[#allocation27_spill]] %s3093_s11  ;;  %p2025_p0 = scmp.ne.s32.totalorder %s19_s23, %s2024_s24 }
   0x4   :  { %3108 = sst [smem:[#allocation28_spill]] %s3094_s12  ;;  %p2029_p1 = scmp.lt.s32.totalorder %s19_s23, %s19_s23 }
   0x5   :  { %p2030_p2 = scmp.lt.s32.totalorder %s2024_s24, %s2024_s24 }
   0x7   :  { %p2031_p3 = por %p2030_p2, %p2029_p1 }
   0x9   :  { %p2032_p4 = pnand %p2031_p3, %p2025_p0 }
   0xb   :  { %2035 = shalt.err (!%p2032_p4)  }
   0xc   :  { %s2316_s25 = smov [#allocation3]  }
   0xd   :  { %21 = dma.vmem_to_smem %s19_s23, 64, %s2316_s25, [#allocation2] }
   0xe   :  { %2278 = dma.done.wait [#allocation2], 64 }
   0xf   :  { %2279 = vsyncadd [#allocation2], 4294967232 }
  0x10   :  { %23 = sfence }
  0x11   :  { %24 = vsyncpa [#allocation5], 0 }
  0x12   :  { %26 = vsyncpa [#allocation5 + $0x1], 0 }
  0x13   :  { %27 = vsyncpa [#allocation8], 0 }
  0x14   :  { %28 = vsyncpa [#allocation11], 0 }
  0x15   :  { %29 = vsyncpa [#allocation6], 0 }
  0x16   :  { %31 = vsyncpa [#allocation6 + $0x1], 0 }
  0x17   :  { %32 = vsyncpa [#allocation15], 0 }
  0x18   :  { %34 = vsyncpa [#allocation15 + $0x1], 0  ;;  %s2401_s0 = smov 0   ;;  %s2403_s26 = smov 0  }
  0x19   :  { %s2405_s27 = smov 0   ;;  %s2407_s28 = smov 0  }
  0x1a LB: > { %3109 = sst [smem:[#allocation23_spill]] %s2302_s0  ;;  %s2422_s29 = sadd.s32 4294967295, %s2314_s28   ;;  %s2314_s28 = sphi %s2407_s28, %s3144_s28   ;;  %s2310_s27 = sphi %s2405_s27, %s3143_s27   ;;  %s2306_s26 = sphi %s2403_s26, %s3142_s26   ;;  %s2302_s0 = sphi %s2401_s0, %s3141_s0  }
  0x1b   : > { %s3095_s30 = sadd.s32 4294967294, %s2314_s28   ;;  %p60_p5 = scmp.ne.s32.totalorder %s2306_s26, %s2302_s0 }
  0x1c   : > { %p3097_p6 = scmp.eq.s32.totalorder %s2422_s29, 0  ;;  %p268_p8 = scmp.eq.s32.totalorder %s3095_s30, 1 }
  0x1d   : > { %p1749_p10 = scmp.ge.s32.totalorder %s2314_s28, 1  ;;  %p327_p12 = scmp.lt.s32.totalorder %s2314_s28, 3 }
  0x1e   : > { %p2433_p9 = por %p3097_p6, %p60_p5  ;;  %p2438_p11 = por %p268_p8, %p60_p5 }
  0x1f   : > { %p2443_p13 = pnand %p1749_p10, %p327_p12  ;;  %s2317_s16 = smov [#allocation7]  }
  0x20   : > { %s3110_s13 = scalar_select %p2433_p9, 1, 0 }
  0x21   : > { %s3111_s14 = scalar_select %p2438_p11, 1, 0 }
  0x22   : > { %s3113_s15 = scalar_select %p2443_p13, 1, 0 }
  0x23   : > { %3112 = sst [smem:[#allocation24_spill]] %s3111_s14  ;;  %s339_s17 = sshll.u32 %s2317_s16, 4  ;;  %s2447_s17 = int_to_ptr.vmem [resolvable:$true] %s339_s17 }
  0x24   : > { %p1913_p0 = pneg %p2443_p13  ;;  %s2318_s19 = smov [#allocation10]  }
  0x25   : > { %s363_s20 = sshll.u32 %s2318_s19, 4  ;;  %s2319_s21 = smov [#allocation9]   ;;  %s2458_s20 = int_to_ptr.vmem [resolvable:$true] %s363_s20 }
  0x26   : > { %p2454_p2 = pnand %p1913_p0, %p3097_p6  ;;  %s2460_s22 = sshll.u32 %s2319_s21, 4  ;;  %s354_s22 = int_to_ptr.vmem [resolvable:$true] %s2460_s22 }
  0x27   : > { %s2036_s25 = scalar_lea.hbm %s3084_s2, 256 }
  0x28   : > { %p2037_p3 = scmp.ne.s32.totalorder %s3084_s2, %s2036_s25  ;;  %p2470_p4 = pneg %p2454_p2 }
  0x29   : > { %p2043_p10 = scmp.lt.u32.totalorder %s2036_s25, %s3084_s2 }
  0x2a   : > { %p2039_p5 = pnand %p2470_p4, %p2037_p3 }
  0x2c   : > { %p2040_p8 = pneg %p2039_p5 }
  0x2e   : > { %p2045_p12 = pnand %p2043_p10, %p2040_p8 }
  0x30   : > { %2048 = shalt.err (!%p2045_p12)
}
  0x31   : > { %s2049_s30 = scalar_lea.vmem %s2447_s17, 256  ;;  %p2057_p7 = scmp.lt.s32.totalorder %s2447_s17, %s2447_s17 }
  0x32   : > { %p2050_p0 = scmp.ne.s32.totalorder %s2447_s17, %s2049_s30  ;;  %p2058_p11 = scmp.lt.s32.totalorder %s2049_s30, %s2049_s30 }
  0x34   : > { %p2052_p1 = pnand %p2050_p0, %p2470_p4  ;;  %p2059_p3 = por %p2058_p11, %p2057_p7 }
  0x36   : > { %p2053_p6 = pneg %p2052_p1 }
  0x38   : > { %p2060_p5 = pnand %p2059_p3, %p2053_p6 }
  0x3a   : > { %2063 = shalt.err (!%p2060_p5)
}
  0x3b   : > { %s2320_s23 = smov 64   ;;  %s2321_s24 = smov 4  }
  0x3c   : > { %1916 = dma.hbm_to_vmem [thread:$0]  (!%p2454_p2), %s3084_s2, 256, %s2447_s17, [#allocation8], %s2320_s23, %s2320_s23, %s2321_s24  }
  0x3d   : > { %s2064_s30 = scalar_lea.hbm %s3087_s5, 512 }
  0x3e   : > { %p2065_p6 = scmp.ne.s32.totalorder %s3087_s5, %s2064_s30  ;;  %p2071_p1 = scmp.lt.u32.totalorder %s2064_s30, %s3087_s5 }
  0x40   : > { %p2067_p7 = pnand %p2065_p6, %p2470_p4 }
  0x42   : > { %p2068_p11 = pneg %p2067_p7 }
  0x44   : > { %p2073_p8 = pnand %p2071_p1, %p2068_p11 }
  0x46   : > { %2076 = shalt.err (!%p2073_p8)
}
  0x47   : > { %s2077_s17 = scalar_lea.vmem %s2458_s20, 512  ;;  %p2085_p3 = scmp.lt.s32.totalorder %s2458_s20, %s2458_s20 }
  0x48   : > { %p2078_p10 = scmp.ne.s32.totalorder %s2458_s20, %s2077_s17  ;;  %p2086_p5 = scmp.lt.s32.totalorder %s2077_s17, %s2077_s17 }
  0x4a   : > { %p2080_p12 = pnand %p2078_p10, %p2470_p4  ;;  %p2087_p6 = por %p2086_p5, %p2085_p3 }
  0x4c   : > { %p2081_p0 = pneg %p2080_p12 }
  0x4e   : > { %p2088_p7 = pnand %p2087_p6, %p2081_p0 }
  0x50   : > { %2091 = shalt.err (!%p2088_p7)
}
  0x51   : > { %1922 = dma.hbm_to_vmem [thread:$0]  (!%p2454_p2), %s3087_s5, 512, %s2458_s20, [#allocation11], %s2320_s23, %s2320_s23, %s2321_s24  }
  0x52   : > { %s2092_s25 = scalar_lea.hbm %s3085_s3, 128 }
  0x53   : > { %p2093_p11 = scmp.ne.s32.totalorder %s3085_s3, %s2092_s25  ;;  %p2099_p10 = scmp.lt.u32.totalorder %s2092_s25, %s3085_s3 }
  0x55   : > { %p2095_p1 = pnand %p2093_p11, %p2470_p4 }
  0x57   : > { %p2096_p8 = pneg %p2095_p1 }
  0x59   : > { %p2101_p12 = pnand %p2099_p10, %p2096_p8 }
  0x5b   : > { %2104 = shalt.err (!%p2101_p12)
}
  0x5c   : > { %s2105_s17 = scalar_lea.vmem %s354_s22, 128  ;;  %p2113_p6 = scmp.lt.s32.totalorder %s354_s22, %s354_s22 }
  0x5d   : > { %p2106_p0 = scmp.ne.s32.totalorder %s354_s22, %s2105_s17  ;;  %p2114_p7 = scmp.lt.s32.totalorder %s2105_s17, %s2105_s17 }
  0x5f   : > { %p2108_p3 = pnand %p2106_p0, %p2470_p4  ;;  %p2115_p9 = por %p2114_p7, %p2113_p6 }
  0x61   : > { %p2109_p5 = pneg %p2108_p3 }
  0x63   : > { %p2116_p13 = pnand %p2115_p9, %p2109_p5 }
  0x65   : > { %2119 = shalt.err (!%p2116_p13)
}
  0x66   : > { %1919 = dma.hbm_to_vmem [thread:$0]  (!%p2454_p2), %s3085_s3, 128, %s354_s22, [#allocation8]  }
  0x67   : > { %s2322_s11 = smov [#allocation12]   ;;  %s2120_s16 = scalar_lea.hbm %s3090_s8, 768 }
  0x68   : > { %s379_s12 = sshll.u32 %s2322_s11, 4  ;;  %p2121_p11 = scmp.ne.s32.totalorder %s3090_s8, %s2120_s16  ;;  %s380_s12 = int_to_ptr.vmem [resolvable:$true] %s379_s12 }
  0x69   : > { %p2127_p1 = scmp.lt.u32.totalorder %s2120_s16, %s3090_s8 }
  0x6a   : > { %p2123_p9 = pnand %p2121_p11, %p2470_p4 }
  0x6c   : > { %p2124_p13 = pneg %p2123_p9 }
  0x6e   : > { %p2129_p8 = pnand %p2127_p1, %p2124_p13 }
  0x70   : > { %2132 = shalt.err (!%p2129_p8)
}
  0x71   : > { %s2133_s22 = scalar_lea.vmem %s380_s12, 768  ;;  %p2141_p3 = scmp.lt.s32.totalorder %s380_s12, %s380_s12 }
  0x72   : > { %p2134_p10 = scmp.ne.s32.totalorder %s380_s12, %s2133_s22  ;;  %p2142_p5 = scmp.lt.s32.totalorder %s2133_s22, %s2133_s22 }
  0x74   : > { %p2136_p12 = pnand %p2134_p10, %p2470_p4  ;;  %p2143_p6 = por %p2142_p5, %p2141_p3 }
  0x76   : > { %p2137_p0 = pneg %p2136_p12 }
  0x78   : > { %p2144_p7 = pnand %p2143_p6, %p2137_p0 }
  0x7a   : > { %2147 = shalt.err (!%p2144_p7)
}
  0x7b   : > { %1925 = dma.hbm_to_vmem [thread:$0]  (!%p2454_p2), %s3090_s8, 768, %s380_s12, [#allocation11], %s2320_s23, %s2320_s23, %s2321_s24  }
  0x7c   : > { %s2561_s14 = sadd.s32 1, %s2314_s28   ;;  %s47_s18 = sadd.s32 1, %s2310_s27 }
  0x7d   : > { %s44_s11 = ssub.s32 %s2314_s28, %s2561_s14  ;;  %p54_p4 = scmp.ne.s32.totalorder %s2310_s27, %s2306_s26 }
  0x7e   : > { %p45_p11 = scmp.eq.s32.totalorder %s44_s11, 0  ;;  %p55_p9 = scmp.eq.s32.totalorder %s2314_s28, 0 }
  0x7f   : > { %p3116_p13 = scmp.eq.s32.totalorder %s2422_s29, 1  ;;  %p1944_p8 = scmp.lt.s32.totalorder %s2314_s28, 2 }
  0x80   : > { %s2577_s25 = scalar_select %p45_p11, %s2310_s27, %s47_s18  }
  0x81   : > { %p2571_p1 = por %p3116_p13, %p54_p4  ;;  %p56_p10 = por %p55_p9, %p54_p4 }
  0x82   : > { %s396_s16 = sand.u32 1, %s2310_s27   ;;  %s1807_s12 = sshll.u32 %s2314_s28, 8 }
  0x83   : > { %s1755_s19 = sshll.u32 %s396_s16, 4  ;;  %s3118_s1 = sld [smem:[#allocation25_spill]] }
  0x84   : > { %s400_s22 = scalar_lea.vmem [#allocation4], %s1755_s19  ;;  %p2588_p2 = pnand %p1944_p8, %p56_p10 }
  0x85   : > { %s407_s20 = sshll.u32 %s400_s22, 4  ;;  %s2592_s18 = scalar_lea.sflag [#allocation5], %s396_s16  ;;  %s2586_s20 = int_to_ptr.vmem [resolvable:$true] %s407_s20 }
  0x86   : > { %p2150_p0 = pneg %p2588_p2 }
  0x89   : > { %s2584_s17 = scalar_lea.hbm %s3118_s1, %s1807_s12  ;;  %s2153_s21 = scalar_lea.hbm %s3118_s1, 512 }
  0x8a   : > { %s2148_s11 = scalar_lea.hbm %s2584_s17, 256  ;;  %p2154_p6 = scmp.lt.u32.totalorder %s2584_s17, %s3118_s1 }
  0x8b   : > { %p2149_p12 = scmp.ne.s32.totalorder %s2584_s17, %s2148_s11  ;;  %p2155_p7 = scmp.lt.u32.totalorder %s2153_s21, %s2148_s11 }
  0x8c   : > { %p2157_p11 = scmp.lt.u32.totalorder %s2148_s11, %s2584_s17 }
  0x8d   : > { %p2151_p3 = pnand %p2150_p0, %p2149_p12  ;;  %p2156_p4 = por %p2155_p7, %p2154_p6 }
  0x8f   : > { %p2152_p5 = pneg %p2151_p3  ;;  %p2158_p9 = por %p2157_p11, %p2156_p4 }
  0x91   : > { %p2159_p13 = pnand %p2158_p9, %p2152_p5 }
  0x93   : > { %2162 = shalt.err (!%p2159_p13)
}
  0x94   : > { %s2163_s16 = scalar_lea.vmem %s2586_s20, 256  ;;  %s2323_s19 = smov [#allocation4]  }
  0x95   : > { %p2164_p8 = scmp.ne.s32.totalorder %s2586_s20, %s2163_s16  ;;  %s2168_s12 = sshll.u32 %s2323_s19, 4  ;;  %s2169_s12 = int_to_ptr.vmem [resolvable:$false] %s2168_s12 }
  0x96   : > { %s2170_s30 = scalar_lea.vmem %s2169_s12, 512  ;;  %p2171_p3 = scmp.lt.s32.totalorder %s2586_s20, %s2169_s12 }
  0x97   : > { %p2166_p10 = pnand %p2164_p8, %p2150_p0  ;;  %p2172_p6 = scmp.lt.s32.totalorder %s2170_s30, %s2163_s16 }
  0x99   : > { %p2167_p12 = pneg %p2166_p10  ;;  %p2173_p7 = por %p2172_p6, %p2171_p3 }
  0x9b   : > { %p2174_p4 = pnand %p2173_p7, %p2167_p12 }
  0x9d   : > { %2177 = shalt.err (!%p2174_p4)
}
  0x9e   : > { %1929 = dma.hbm_to_vmem [thread:$0]  (!%p2588_p2), %s2584_s17, 256, %s2586_s20, %s2592_s18, %s2320_s23, %s2320_s23, %s2321_s24  }
  0x9f   : > { %p3120_p0 = scmp.ne.s32.totalorder %s3113_s15, 0 }
  0xa0   : > { %s2626_s11 = sand.u32 (!%p3120_p0), 1, %s2306_s26   ;;  %p3121_p5 = scmp.ne.s32.totalorder (!%p3120_p0), %s3110_s13, 0 }
  0xa1   : > { %434 = sbr.rel (%p3120_p0) target bundleno = 836 (0x344), region = 56  ;;  %s3104_s21 = sshll.u32 (!%p3120_p0), %s2626_s11, 4 }
  0xa2   : > { %s437_s22 = scalar_lea.sflag (!%p3120_p0), [#allocation5], %s2626_s11  ;;  %s2632_s10 = scalar_lea.vmem (!%p3120_p0), [#allocation4], %s3104_s21 }
  0xa8   : > { %2281 = dma.done.wait (%p3121_p5), %s437_s22, 256  }
  0xa9   : > { %2283 = vsyncadd (%p3121_p5), %s437_s22, 4294967040  ;;  %p3122_p2 = scmp.eq.s32.totalorder %s2422_s29, 0 }
  0xab   : > { %2285 = dma.done.wait (%p3122_p2), [#allocation8], 384   ;;  %p3123_p11 = pmov %p3122_p2 }
  0xac   : > { %p3124_p9 = pmov %p3122_p2 }
  0xad   : > { %2287 = vsyncadd (%p3123_p11), [#allocation8], 4294966912 }
  0xae   : > { %2289 = dma.done.wait (%p3124_p9), [#allocation11], 1280   ;;  %p3125_p13 = pmov %p3122_p2 }
  0xaf   : > { %v2324_v0 = vmov 0.0   ;;  %vm2325_vm0 = vmmov 0   ;;  %v1995_v1 = vld [vmem:[#allocation12] sm:$0xff]   ;;  %p514_p8 = scmp.lt.s32.totalorder %s2422_s29, 1  ;;  %v1996_v2 = vld [vmem:[#allocation12 + $0x8] sm:$0xff]   ;;  %v1997_v3 = vld [vmem:[#allocation12 + $0x10] sm:$0xff]   ;;  %v617_v17 = vlaneseq }
  0xb0   : > { %2291 = vsyncadd (%p3125_p13), [#allocation11], 4294966016  ;;  %1853 = vmatprep.subr.bf16.mxu0 %v2324_v0  ;;  %1869 = vmatprep.subr.bf16.mxu1 %v2324_v0  ;;  %v2001_v4 = vld [vmem:[#allocation10] sm:$0xff]   ;;  %v2002_v5 = vld [vmem:[#allocation10 + $0x8] sm:$0xff]   ;;  %vm724_vm1 = vcmask 523264   ;;  %vm1024_vm2 = vcmask 261120  }
  0xb1   : > { %1865 = vmatprep.mubr.msk.bf16.mxu0 %vm2325_vm0, %v2324_v0  ;;  %1877 = vmatprep.mubr.msk.bf16.mxu1 %vm2325_vm0, %v2324_v0  ;;  %s515_s13 = scalar_select %p514_p8, %s2422_s29, 1  ;;  %v1998_v6 = vld [vmem:[#allocation12 + $0x18] sm:$0xff]   ;;  %v2003_v7 = vld [vmem:[#allocation10 + $0x10] sm:$0xff]   ;;  %v1999_v8 = vld [vmem:[#allocation12 + $0x20] sm:$0xff]   ;;  %vm573_vm3 = vcmask 785408   ;;  %v2658_v20 = vshrl.u32 %v617_v17, 7 }
  0xb2   : > { %1854 = vmatpush3.bf16.msra.mxu0 %v1995_v1  ;;  %1870 = vmatpush3.bf16.msra.mxu1 %v2001_v4  ;;  %v2004_v9 = vld [vmem:[#allocation10 + $0x18] sm:$0xff]   ;;  %v2006_v10 = vld [vmem:[#allocation7] sm:$0xff]   ;;  %v2007_v14 = vld [vmem:[#allocation7 + $0x8] sm:$0xff]   ;;  %s619_s12 = sshra.s32 %s2422_s29, 7  ;;  %v2326_v18 = vmov 1966171168  }
  0xb3   : > { %1855 = vmatprep.subr.bf16.mxu0 %v2324_v0  ;;  %s1808_s15 = sshll.u32 %s515_s13, 3  ;;  %1871 = vmatprep.subr.bf16.mxu1 %v2324_v0  ;;  %s1769_s20 = sshll.u32 %s515_s13, 2  ;;  %v2000_v11 = vld [vmem:[#allocation12 + $0x28] sm:$0xff]   ;;  %v2009_v16 = vld [vmem:[%s2632_s10 + $0x8] sm:$0xff]   ;;  %v786_v19 = vunpack.c.l.s4 %v2326_v18  ;;  %v2661_v23 = vsub.s32 1, %v2658_v20  ;;  %v2664_v24 = vsub.s32 0, %v2658_v20 }
  0xb4   : > { %s518_s17 = scalar_lea.vmem %s3086_s4, %s1808_s15  ;;  %s522_s19 = scalar_lea.vmem %s3089_s7, %s1769_s20  ;;  %v2008_v13 = vld [vmem:[%s2632_s10] sm:$0xff]   ;;  %v2682_v29 = vsub.s32 2, %v2658_v20  ;;  %v2327_v30 = vmov 1983009808   ;;  %vm639_vm5 = vcmp.gt.s32.totalorder %v2658_v20, 0  ;;  %vm650_vm6 = vcmp.lt.s32.totalorder %v2658_v20, 7 }
  0xb5   : > { %v2005_v12 = vld [vmem:[%s518_s17] sm:$0xff]   ;;  %s1809_s30 = sshll.u32 %s619_s12, 7  ;;  %s624_s13 = sand.u32 127, %s2422_s29  ;;  %v787_v21 = vunpack.c.0.s8 %v786_v19  ;;  %v868_v31 = vunpack.c.l.s4 %v2327_v30  ;;  %vm912_vm11 = vcmp.lt.s32.totalorder %v2658_v20, 1 }
  0xb6   : > { %1856 = vmatpush3.bf16.msra.mxu0 %v1996_v2  ;;  %1872 = vmatpush3.bf16.msra.mxu1 %v2002_v5  ;;  %v524_v15 = vld [vmem:[%s522_s19] sm:$0xf]  ;;  %s1810_s22 = sadd.s32 256, %s1809_s30  ;;  %s1812_s24 = sadd.s32 128, %s1809_s30 }
  0xb7   : > { %1857 = vmatprep.subr.bf16.mxu0 %v2324_v0  ;;  %1873 = vmatprep.subr.bf16.mxu1 %v2324_v0  ;;  %s625_s15 = sadd.s32 %s1810_s22, %s624_s13  ;;  %s772_s17 = sadd.s32 %s1812_s24, %s624_s13  ;;  %v2672_v26 = vsub.s32 %v787_v21, %v2658_v20  ;;  %v2677_v27 = vld [vmem:[%s3091_s9] sm:$0xff]  ;;  %v869_v47 = vunpack.c.0.s8 %v868_v31 }
  0xb8   : > { %s626_s23 = sld [smem:[#allocation3 + %s625_s15]]  ;;  %v636_v37 = vrot.slane %v2677_v27, %v2661_v23  ;;  %v646_v38 = vrot.slane %v2677_v27, %v2664_v24  ;;  %v657_v46 = vrot.slane %v2677_v27, %v2682_v29  ;;  %s1766_s30 = sshll.u32 %s2626_s11, 2 }
  0xb9   : > { %s2684_s18 = sld [smem:[#allocation3 + %s772_s17]]  ;;  %v2712_v63 = vsub.s32 %v869_v47, %v2658_v20  ;;  %s2926_s22 = scalar_lea.vmem [#allocation16], %s1766_s30 }
  0xba   : > { %1858 = vmatpush3.bf16.msra.mxu0 %v1997_v3  ;;  %1874 = vmatpush3.bf16.msra.mxu1 %v2003_v7  ;;  %s2708_s16 = sld [smem:[#allocation3 + %s2422_s29]]  ;;  %s1765_s13 = sshll.u32 %s2626_s11, 3 }
  0xbb   : > { %1859 = vmatprep.subr.bf16.mxu0 %v2324_v0  ;;  %1875 = vmatprep.subr.bf16.mxu1 %v2324_v0  ;;  %s1504_s15 = sand.u32 1, %s2422_s29   ;;  %s506_s24 = scalar_lea.vmem [#allocation14], %s1765_s13 }
  0xbc   : > { %s1539_s17 = sshll.u32 %s506_s24, 4  ;;  %s1804_s10 = sshll.u32 %s2422_s29, 6  ;;  %s2947_s17 = int_to_ptr.vmem [resolvable:$true] %s1539_s17 }
  0xbd   : > { %s1555_s20 = sshll.u32 %s2926_s22, 4  ;;  %s3132_s19 = sld [smem:[#allocation27_spill]]  ;;  %s2954_s20 = int_to_ptr.vmem [resolvable:$true] %s1555_s20 }
  0xbe   : > { %1860 = vmatpush3.bf16.msra.mxu0 %v1998_v6  ;;  %1876 = vmatpush3.bf16.msra.mxu1 %v2004_v9  ;;  %v627_v22 = vstv %s626_s23  ;;  %s1820_s23 = sshll.u32 %s2422_s29, 7  ;;  %s3133_s13 = sld [smem:[#allocation28_spill]] }
  0xbf   : > { %1861 = vmatprep.subr.bf16.mxu0 %v2324_v0  ;;  %1881 = vmatprep.subr.bf16.mxu1 %v2006_v10  ;;  %vm2667_vm4 = vcmp.lt.s32.totalorder %v2658_v20, %v627_v22  ;;  %v774_v62 = vstv %s2684_s18  ;;  %v2739_v22 = vadd.s32 16, %v2658_v20  ;;  %s2956_s18 = scalar_lea.sflag [#allocation15], %s1504_s15 }
  0xc0   : > { %vm2729_vm7 = vcmp.lt.s32.totalorder %v2658_v20, %v774_v62 }
  0xc1   : > { %1878 = vmatmul.mubr.msk.bf16.vlgmr.msra.gmra.mrb[0].mxu1 %vm724_vm1, %v2005_v12 }
  0xc2   : > { %1862 = vmatpush3.bf16.msra.mxu0 %v1999_v8  ;;  %1882 = vmatpush3.bf16.msra.mxu1 %v2006_v10 }
  0xc3   : > { %1863 = vmatprep.subr.bf16.mxu0 %v2324_v0  ;;  %1885 = vmatprep.mubr.msk.bf16.mxu1 %vm1024_vm2, %v2008_v13  ;;  %s2945_s12 = scalar_lea.hbm %s3132_s19, %s1820_s23  ;;  %s2178_s23 = scalar_lea.vmem %s2947_s17, 128 }
  0xc4   : > { %1883 = vmatprep.subr.bf16.mxu1 %v2007_v14  ;;  %s2952_s21 = scalar_lea.hbm %s3133_s13, %s1804_s10  ;;  %p2179_p10 = scmp.ne.s32.totalorder %s2947_s17, %s2178_s23 }
  0xc6   : > { %1864 = vmatpush3.bf16.msra.mxu0 %v2000_v11  ;;  %1884 = vmatpush3.bf16.msra.mxu1 %v2007_v14  ;;  %p2180_p12 = pnand %p2179_p10, %p2571_p1 }
  0xc8   : > { %p2181_p3 = pneg %p2180_p12 }
  0xc9   : > { %1866 = vmatmul.mubr.msk.bf16.vlgmr.msra.gmra.mrb[0].mxu0 %vm573_vm3, %v524_v15  ;;  %1886 = vmatmul.mubr.msk.bf16.vlgmr.msra.gmra.mrb[4].mxu1 %vm1024_vm2, %v2009_v16  ;;  %v2734_v16 = vadd.s32 8, %v2658_v20 }
  0xcb   : > { %vm2755_vm8 = vcmp.lt.s32.totalorder %v2734_v16, %v774_v62  ;;  %vm933_vm12 = vcmp.lt.s32.totalorder %v2734_v16, 15 }
 0x194   : > { %v2679_v28 = vpop.f32.mrb[0].mxu1 }
 0x195   : > { %v1879_v32 = vpop.f32.mrb[1].mxu1 }
 0x196   : > { %v2686_v34 = vpop.f32.mrb[2].mxu1 }
 0x197   : > { %v1880_v39 = vpop.f32.mrb[3].mxu1 }
 0x19c   : > { %v611_v33 = vpop.f32.mrb[0].mxu0  ;;  %v1887_v59 = vpop.f32.mrb[4].mxu1 }
 0x19d   : > { %v631_v35 = vsel %vm2667_vm4, %v611_v33, 0.0  ;;  %v1867_v36 = vpop.f32.mrb[1].mxu0  ;;  %v1065_v0 = vpop.f32.mrb[5].mxu1  ;;  %v2746_v33 = vld [vmem:[%s3088_s6] sm:$0xff] }
 0x19e   : > { %v638_v40 = vrot.slane %v631_v35, 7  ;;  %v784_v41 = vcombine.high %v631_v35, %v631_v35  ;;  %v791_v42 = vrot.slane %v631_v35, %v2672_v26  ;;  %v614_v43 = vpop.f32.mrb[2].mxu0  ;;  %v649_v45 = vrot.slane %v631_v35, 1  ;;  %v2717_v5 = vpop.f32.mrb[6].mxu1 }
 0x19f   : > { %v1868_v44 = vpop.f32.mrb[3].mxu0  ;;  %v637_v52 = vmul.f32 %v636_v37, %v631_v35  ;;  %v2723_v10 = vpop.f32.mrb[7].mxu1  ;;  %v2749_v35 = vstv %s2708_s16  ;;  %v781_v36 = vsel %vm2729_vm7, %v2679_v28, 0.0  ;;  %v2770_v43 = vrot.slane %v2746_v33, %v2664_v24  ;;  %s2328_s16 = smov [#allocation14]  }
 0x1a0   : > { %v798_v48 = vrot.slane %v784_v41, %v2672_v26  ;;  %v799_v49 = vcombine.high %v791_v42, %v791_v42  ;;  %v807_v50 = vrot.slane %v791_v42, %v2672_v26  ;;  %v642_v51 = vsel %vm639_vm5, %v638_v40, 0.0  ;;  %s2182_s1 = sshll.u32 %s2328_s16, 4  ;;  %s2183_s1 = int_to_ptr.vmem [resolvable:$false] %s2182_s1 }
 0x1a1   : > { %v647_v53 = vmul.f32 %v646_v38, %v642_v51  ;;  %v653_v54 = vsel %vm650_vm6, %v649_v45, 0.0  ;;  %v907_v41 = vrot.slane %v2746_v33, %v2661_v23  ;;  %vm1086_vm9 = vcmp.lt.s32.totalorder %v2739_v22, %v2749_v35  ;;  %s2184_s30 = scalar_lea.vmem %s2183_s1, 256  ;;  %p2185_p6 = scmp.lt.s32.totalorder %s2947_s17, %s2183_s1 }
 0x1a2   : > { %v800_v55 = vcombine.high %v798_v48, %v798_v48  ;;  %v814_v56 = vrot.slane %v798_v48, %v2672_v26  ;;  %v821_v57 = vrot.slane %v799_v49, %v2672_v26  ;;  %v829_v58 = vcombine.high %v807_v50, %v807_v50  ;;  %p2186_p7 = scmp.lt.s32.totalorder %s2184_s30, %s2178_s23 }
 0x1a3   : > { %v648_v60 = vadd.f32 %v647_v53, %v637_v52  ;;  %v658_v61 = vmul.f32 %v657_v46, %v653_v54  ;;  %v836_v2 = vrot.slane %v807_v50, %v2664_v24  ;;  %vm1084_vm10 = vcmp.lt.s32.totalorder %v2658_v20, %v2749_v35 }
 0x1a4   : > { %v831_v1 = vcombine.high %v821_v57, %v821_v57  ;;  %v840_v3 = vrot.slane %v821_v57, %v2664_v24  ;;  %v828_v4 = vrot.slane %v800_v55, %v2672_v26  ;;  %v844_v7 = vrot.slane %v829_v58, %v2664_v24  ;;  %p2187_p4 = por %p2186_p7, %p2185_p6 }
 0x1a5   : > { %v2719_v6 = vadd.f32 %v658_v61, %v648_v60  ;;  %v830_v8 = vcombine.high %v814_v56, %v814_v56  ;;  %v852_v9 = vrot.slane %v814_v56, %v2664_v24  ;;  %v782_v44 = vsel %vm2755_vm8, %v2686_v34, 0.0 }
 0x1a6   : > { %v848_v11 = vrot.slane %v831_v1, %v2664_v24  ;;  %v865_v12 = vcombine.low %v836_v2, %v840_v3  ;;  %v832_v13 = vcombine.high %v828_v4, %v828_v4  ;;  %v856_v14 = vrot.slane %v828_v4, %v2664_v24  ;;  %p2188_p0 = pnand %p2187_p4, %p2181_p3 }
 0x1a7   : > { %660 = vadd.xlane.f32.xlu1 %v2719_v6  ;;  %v860_v18 = vrot.slane %v830_v8, %v2664_v24  ;;  %v2778_v45 = vrot.slane %v2746_v33, %v2682_v29  ;;  %v2781_v46 = vadd.s32 24, %v2658_v20  ;;  %v2786_v49 = vsel %vm1086_vm9, %v1887_v59, 0.0 }
 0x1a8   : > { %v866_v17 = vcombine.low %v844_v7, %v848_v11  ;;  %v864_v19 = vrot.slane %v832_v13, %v2664_v24  ;;  %v882_v21 = vcombine.low %v852_v9, %v856_v14  ;;  %v873_v30 = vrot.slane %v865_v12, %v2712_v63 }
 0x1a9   : > { %v2791_v34 = vsel %vm1084_vm10, %v1065_v0, 0.0  ;;  %vm1087_vm13 = vcmp.lt.s32.totalorder %v2781_v46, %v2749_v35  ;;  %vm1085_vm14 = vcmp.lt.s32.totalorder %v2734_v16, %v2749_v35  ;;  %vm1390_vm15 = vcmp.lt.s32.totalorder %v2781_v46, 31 }
 0x1aa   : > { %v880_v31 = vrot.slane %v866_v17, %v2712_v63  ;;  %v883_v32 = vcombine.low %v860_v18, %v864_v19  ;;  %v890_v39 = vrot.slane %v882_v21, %v2712_v63 }
 0x1ac   : > { %v881_v37 = vcombine.low %v873_v30, %v880_v31  ;;  %v897_v40 = vrot.slane %v883_v32, %v2712_v63 }
 0x1ae   : > { %v901_v28 = vadd.f32 %v881_v37, %v781_v36  ;;  %v898_v42 = vcombine.low %v890_v39, %v897_v40 }
 0x1b0   : > { %v1102_v47 = vcombine.high %v901_v28, %v901_v28  ;;  %v902_v48 = vadd.f32 %v898_v42, %v782_v44  ;;  %v910_v50 = vrot.slane %v901_v28, 7  ;;  %v928_v51 = vrot.slane %v901_v28, 1 }
 0x1b1   : > { %v1109_v52 = vrot.slane %v901_v28, %v2672_v26  ;;  %v908_v53 = vmul.f32 %v907_v41, %v901_v28 }
 0x1b2   : > { %v1151_v54 = vcombine.high %v902_v48, %v902_v48  ;;  %v909_v55 = vmul.f32 %v907_v41, %v902_v48  ;;  %v911_v56 = vrot.slane %v902_v48, 7  ;;  %v929_v57 = vrot.slane %v902_v48, 1 }
 0x1b3   : > { %v1158_v58 = vrot.slane %v902_v48, %v2672_v26  ;;  %v1117_v60 = vcombine.high %v1109_v52, %v1109_v52  ;;  %v1125_v59 = vrot.slane %v1109_v52, %v2672_v26  ;;  %v1116_v61 = vrot.slane %v1102_v47, %v2672_v26 }
 0x1b4   : > { %v913_v62 = vsel %vm912_vm11, %v910_v50, %v911_v56  ;;  %v931_v0 = vsel %vm650_vm6, %v929_v57, %v928_v51  ;;  %v1165_v1 = vrot.slane %v1151_v54, %v2672_v26  ;;  %v914_v2 = vsel %vm912_vm11, %v911_v56, %v910_v50 }
 0x1b5   : > { %v925_v3 = vmul.f32 %v2770_v43, %v913_v62  ;;  %v939_v4 = vsel %vm933_vm12, %v931_v0, 0.0  ;;  %v1166_v7 = vcombine.high %v1158_v58, %v1158_v58  ;;  %v1174_v8 = vrot.slane %v1158_v58, %v2672_v26 }
 0x1b6   : > { %v945_v9 = vmul.f32 %v2778_v45, %v939_v4  ;;  %v1139_v11 = vrot.slane %v1117_v60, %v2672_v26  ;;  %v1147_v12 = vcombine.high %v1125_v59, %v1125_v59  ;;  %v1203_v13 = vrot.slane %v1125_v59, %v2664_v24 }
 0x1b7   : > { %v927_v14 = vadd.f32 %v925_v3, %v909_v55  ;;  %v1188_v17 = vrot.slane %v1166_v7, %v2672_v26  ;;  %v1196_v18 = vcombine.high %v1174_v8, %v1174_v8  ;;  %v1235_v19 = vrot.slane %v1174_v8, %v2664_v24 }
 0x1b8   : > { %v1149_v21 = vcombine.high %v1139_v11, %v1139_v11  ;;  %v1207_v30 = vrot.slane %v1139_v11, %v2664_v24  ;;  %v1211_v31 = vrot.slane %v1147_v12, %v2664_v24  ;;  %v1167_v32 = vcombine.high %v1165_v1, %v1165_v1 }
 0x1b9   : > { %v2815_v36 = vadd.f32 %v945_v9, %v927_v14  ;;  %v1198_v37 = vcombine.high %v1188_v17, %v1188_v17  ;;  %v1239_v39 = vrot.slane %v1188_v17, %v2664_v24  ;;  %v1243_v40 = vrot.slane %v1196_v18, %v2664_v24 }
 0x1ba   : > { %v1215_v41 = vrot.slane %v1149_v21, %v2664_v24  ;;  %v1264_v28 = vcombine.low %v1203_v13, %v1207_v30  ;;  %v1181_v42 = vrot.slane %v1165_v1, %v2672_v26  ;;  %v1195_v44 = vrot.slane %v1167_v32, %v2672_v26  ;;  %v2850_v32 = vld [vmem:[#allocation9] sm:$0xff] }
 0x1bb   : > { %950 = vadd.xlane.f32.xlu0 %v2815_v36  ;;  %v1247_v47 = vrot.slane %v1198_v37, %v2664_v24  ;;  %v1298_v48 = vcombine.low %v1235_v19, %v1239_v39  ;;  %v918_v50 = vsel %vm639_vm5, %v914_v2, 0.0  ;;  %v930_v52 = vsel %vm650_vm6, %v928_v51, %v929_v57 }
 0x1bc   : > { %v1265_v54 = vcombine.low %v1211_v31, %v1215_v41  ;;  %v1272_v55 = vrot.slane %v1264_v28, %v2712_v63  ;;  %v1197_v56 = vcombine.high %v1181_v42, %v1181_v42  ;;  %v1199_v58 = vcombine.high %v1195_v44, %v1195_v44 }
 0x1bd   : > { %v1299_v60 = vcombine.low %v1243_v40, %v1247_v47  ;;  %v1306_v59 = vrot.slane %v1298_v48, %v2712_v63  ;;  %v1251_v62 = vrot.slane %v1181_v42, %v2664_v24  ;;  %v1255_v0 = vrot.slane %v1195_v44, %v2664_v24 }
 0x1be   : > { %v1279_v1 = vrot.slane %v1265_v54, %v2712_v63  ;;  %v1259_v3 = vrot.slane %v1197_v56, %v2664_v24  ;;  %v1263_v2 = vrot.slane %v1199_v58, %v2664_v24  ;;  %v924_v51 = vmul.f32 %v2770_v43, %v918_v50 }
 0x1bf   : > { %v1313_v57 = vrot.slane %v1299_v60, %v2712_v63  ;;  %v1315_v4 = vcombine.low %v1251_v62, %v1255_v0  ;;  %v944_v7 = vmul.f32 %v2778_v45, %v930_v52  ;;  %v1118_v8 = vcombine.high %v1116_v61, %v1116_v61 }
 0x1c0   : > { %v1280_v9 = vcombine.low %v1272_v55, %v1279_v1  ;;  %v1316_v11 = vcombine.low %v1259_v3, %v1263_v2  ;;  %v926_v12 = vadd.f32 %v924_v51, %v908_v53  ;;  %v1132_v13 = vrot.slane %v1116_v61, %v2672_v26 }
 0x1c1   : > { %v1314_v14 = vcombine.low %v1306_v59, %v1313_v57  ;;  %v1323_v17 = vrot.slane %v1315_v4, %v2712_v63  ;;  %v1146_v18 = vrot.slane %v1118_v8, %v2672_v26  ;;  %v1099_v26 = vsel %vm1087_vm13, %v2717_v5, 0.0 }
 0x1c2   : > { %v1336_v43 = vadd.f32 %v1280_v9, %v2791_v34  ;;  %v1330_v19 = vrot.slane %v1316_v11, %v2712_v63  ;;  %v2845_v21 = vadd.f32 %v944_v7, %v926_v12  ;;  %v1148_v45 = vcombine.high %v1132_v13, %v1132_v13 }
 0x1c3   : > { %v1338_v30 = vadd.f32 %v1314_v14, %v2786_v49  ;;  %v1150_v53 = vcombine.high %v1146_v18, %v1146_v18  ;;  %v1219_v61 = vrot.slane %v1132_v13, %v2664_v24  ;;  %v1223_v31 = vrot.slane %v1146_v18, %v2664_v24 }
 0x1c4   : > { %v1331_v37 = vcombine.low %v1323_v17, %v1330_v19  ;;  %948 = vadd.xlane.f32.xlu0 %v2845_v21  ;;  %v1227_v49 = vrot.slane %v1148_v45, %v2664_v24  ;;  %v1344_v41 = vrot.slane %v2850_v32, %v2661_v23  ;;  %v1370_v28 = vrot.slane %v2850_v32, %v2664_v24 }
 0x1c5   : > { %v1231_v34 = vrot.slane %v1150_v53, %v2664_v24  ;;  %v1281_v39 = vcombine.low %v1219_v61, %v1223_v31  ;;  %v1406_v42 = vrot.slane %v2850_v32, %v2682_v29  ;;  %v1349_v44 = vrot.slane %v1336_v43, 7 }
 0x1c6   : > { %v1339_v40 = vadd.f32 %v1331_v37, %v1099_v26  ;;  %v1379_v47 = vrot.slane %v1336_v43, 1  ;;  %v1351_v5 = vrot.slane %v1338_v30, 7  ;;  %v1381_v50 = vrot.slane %v1338_v30, 1 }
 0x1c7   : > { %v1282_v48 = vcombine.low %v1227_v49, %v1231_v34  ;;  %v1097_v23 = vsel %vm1085_vm14, %v2723_v10, 0.0  ;;  %v1289_v55 = vrot.slane %v1281_v39, %v2712_v63  ;;  %v1345_v1 = vmul.f32 %v1344_v41, %v1336_v43 }
 0x1c8   : > { %v1352_v52 = vrot.slane %v1339_v40, 7  ;;  %v1382_v54 = vrot.slane %v1339_v40, 1  ;;  %v1348_v56 = vmul.f32 %v1344_v41, %v1339_v40  ;;  %v1347_v11 = vmul.f32 %v1344_v41, %v1338_v30 }
 0x1c9   : > { %v1296_v24 = vrot.slane %v1282_v48, %v2712_v63 }
 0x1ca   : > { %v1356_v29 = vsel %vm912_vm11, %v1352_v52, %v1349_v44  ;;  %v1353_v58 = vsel %vm912_vm11, %v1351_v5, %v1352_v52  ;;  %v1386_v60 = vsel %vm650_vm6, %v1382_v54, %v1379_v47  ;;  %v1383_v59 = vsel %vm650_vm6, %v1381_v50, %v1382_v54 }
 0x1cb   : > { %v1297_v62 = vcombine.low %v1289_v55, %v1296_v24  ;;  %v1363_v10 = vsel %vm639_vm5, %v1356_v29, 0.0  ;;  %v1374_v0 = vmul.f32 %v1370_v28, %v1353_v58  ;;  %v1402_v63 = vsel %vm1390_vm15, %v1386_v60, 0.0 }
 0x1cc   : > { %v1371_v3 = vmul.f32 %v1370_v28, %v1363_v10  ;;  %v1410_v2 = vmul.f32 %v1406_v42, %v1402_v63  ;;  %v1409_v12 = vmul.f32 %v1406_v42, %v1383_v59 }
 0x1cd   : > { %v1337_v51 = vadd.f32 %v1297_v62, %v1097_v23  ;;  %v1378_v57 = vadd.f32 %v1374_v0, %v1348_v56 }
 0x1ce   : > { %v1375_v4 = vadd.f32 %v1371_v3, %v1345_v1 }
 0x1cf   : > { %v1350_v7 = vrot.slane %v1337_v51, 7  ;;  %v1380_v8 = vrot.slane %v1337_v51, 1  ;;  %v1414_v9 = vadd.f32 %v1410_v2, %v1378_v57  ;;  %v1346_v43 = vmul.f32 %v1344_v41, %v1337_v51 }
 0x1d0   : > { %v2914_v51 = vsub.s32 3, %v2658_v20  ;;  %v2917_v57 = vsub.s32 4, %v2658_v20 }
 0x1d1   : > { %v1355_v13 = vsel %vm912_vm11, %v1349_v44, %v1350_v7  ;;  %v1384_v14 = vsel %vm650_vm6, %v1380_v8, %v1381_v50  ;;  %v1385_v17 = vsel %vm650_vm6, %v1379_v47, %v1380_v8  ;;  %v1354_v18 = vsel %vm912_vm11, %v1350_v7, %v1351_v5 }
 0x1d2   : > { %v1372_v19 = vmul.f32 %v1370_v28, %v1355_v13  ;;  %v1407_v45 = vmul.f32 %v1406_v42, %v1385_v17  ;;  %v1373_v53 = vmul.f32 %v1370_v28, %v1354_v18  ;;  %v1408_v31 = vmul.f32 %v1406_v42, %v1384_v14 }
 0x1d3   : > { %v680_v8 = vrot.slane %v2677_v27, %v2917_v57 }
 0x1d4   : > { %v1376_v61 = vadd.f32 %v1372_v19, %v1346_v43  ;;  %v1411_v30 = vadd.f32 %v1407_v45, %v1375_v4  ;;  %v1377_v37 = vadd.f32 %v1373_v53, %v1347_v11  ;;  %v675_v4 = vrot.slane %v2677_v27, %v2914_v51 }
 0x1d6   : > { %v1412_v26 = vadd.f32 %v1408_v31, %v1376_v61  ;;  %1415 = vadd.xlane.f32.xlu1 %v1411_v30  ;;  %v1413_v49 = vadd.f32 %v1409_v12, %v1377_v37  ;;  %v973_v61 = vrot.slane %v2746_v33, %v2914_v51  ;;  %v979_v31 = vrot.slane %v2746_v33, %v2917_v57 }
 0x1d8   : > { %1417 = vadd.xlane.f32.xlu0 %v1412_v26 }
 0x1da   : > { %1419 = vadd.xlane.f32.xlu1 %v1413_v49 }
 0x1dc   : > { %1421 = vadd.xlane.f32.xlu0 %v1414_v9 }
 0x234   : > { %v661_v34 = vpop.xlane.xlu1 %660 }
 0x235   : > { %v663_v39 = vmul.f32 0.0078125, %v661_v34 }
 0x237   : > { %v664_v40 = vsub.f32 %v2719_v6, %v663_v39 }
 0x239   : > { %v665_v44 = vmul.f32 %v664_v40, %v664_v40 }
 0x23b   : > { %666 = vadd.xlane.f32.xlu1 %v665_v44 }
 0x248   : > { %v951_v41 = vpop.xlane.xlu0 %950 }
 0x249   : > { %v953_v47 = vmul.f32 0.0078125, %v951_v41 }
 0x24b   : > { %v955_v28 = vsub.f32 %v2815_v36, %v953_v47 }
 0x24d   : > { %v957_v48 = vmul.f32 %v955_v28, %v955_v28 }
 0x24f   : > { %960 = vadd.xlane.f32.xlu0 %v957_v48 }
 0x251   : > { %v949_v42 = vpop.xlane.xlu0 %948 }
 0x252   : > { %v952_v5 = vmul.f32 0.0078125, %v949_v42 }
 0x254   : > { %v954_v50 = vsub.f32 %v2845_v21, %v952_v5 }
 0x256   : > { %v956_v52 = vmul.f32 %v954_v50, %v954_v50 }
 0x258   : > { %958 = vadd.xlane.f32.xlu1 %v956_v52 }
 0x263   : > { %v1416_v54 = vpop.xlane.xlu1 %1415 }
 0x264   : > { %v1423_v23 = vmul.f32 0.0078125, %v1416_v54 }
 0x265   : > { %v1418_v55 = vpop.xlane.xlu0 %1417 }
 0x266   : > { %v1424_v24 = vmul.f32 0.0078125, %v1418_v55  ;;  %v2897_v56 = vsub.f32 %v1411_v30, %v1423_v23 }
 0x267   : > { %v1420_v6 = vpop.xlane.xlu1 %1419 }
 0x268   : > { %v2899_v29 = vsub.f32 %v1412_v26, %v1424_v24  ;;  %v1425_v58 = vmul.f32 0.0078125, %v1420_v6  ;;  %v1431_v36 = vmul.f32 %v2897_v56, %v2897_v56 }
 0x269   : > { %v1422_v60 = vpop.xlane.xlu0 %1421 }
 0x26a   : > { %v1426_v59 = vmul.f32 0.0078125, %v1422_v60  ;;  %v1432_v21 = vmul.f32 %v2899_v29, %v2899_v29  ;;  %v2905_v62 = vsub.f32 %v1413_v49, %v1425_v58  ;;  %1435 = vadd.xlane.f32.xlu0 %v1431_v36 }
 0x26c   : > { %v2907_v10 = vsub.f32 %v1414_v9, %v1426_v59  ;;  %1437 = vadd.xlane.f32.xlu1 %v1432_v21  ;;  %v1433_v0 = vmul.f32 %v2905_v62, %v2905_v62 }
 0x26e   : > { %v1434_v63 = vmul.f32 %v2907_v10, %v2907_v10  ;;  %1439 = vadd.xlane.f32.xlu0 %v1433_v0 }
 0x270   : > { %1441 = vadd.xlane.f32.xlu1 %v1434_v63 }
 0x2c8   : > { %v667_v1 = vpop.xlane.xlu1 %666 }
 0x2c9   : > { %v668_v3 = vmul.f32 0.0078125, %v667_v1 }
 0x2cb   : > { %v669_v2 = vadd.f32 1e-05, %v668_v3 }
 0x2cd   : > { %2010 = vrsqrt.f32 %v669_v2 }
 0x2d7   : > { %v2011_v7 = vpop.eup %2010 }
 0x2d8   : > { %v671_v9 = vmul.f32 %v2011_v7, %v664_v40 }
 0x2da   : > { %v676_v11 = vmul.f32 %v675_v4, %v671_v9 }
 0x2dc   : > { %v681_v12 = vadd.f32 %v680_v8, %v676_v11  ;;  %v961_v13 = vpop.xlane.xlu0 %960 }
 0x2dd   : > { %v963_v14 = vmul.f32 0.0078125, %v961_v13 }
 0x2de   : > { %v682_v17 = vsel %vm2667_vm4, %v681_v12, %v680_v8 }
 0x2df   : > { %v965_v18 = vadd.f32 1e-05, %v963_v14  ;;  %v683_v43 = vpack.c.bf16 %v682_v17, %v682_v17 }
 0x2e1   : > { %684 = vst [vmem:[%s2926_s22] sm:$0xf] %v683_v43  ;;  %2012 = vrsqrt.f32 %v965_v18 }
 0x2e5   : > { %v959_v19 = vpop.xlane.xlu1 %958 }
 0x2e6   : > { %v962_v27 = vmul.f32 0.0078125, %v959_v19 }
 0x2e8   : > { %v964_v45 = vadd.f32 1e-05, %v962_v27 }
 0x2ea   : > { %2014 = vrsqrt.f32 %v964_v45 }
 0x2eb   : > { %v2013_v53 = vpop.eup %2012 }
 0x2ec   : > { %v969_v25 = vmul.f32 %v2013_v53, %v955_v28 }
 0x2ee   : > { %v975_v30 = vmul.f32 %v973_v61, %v969_v25 }
 0x2f0   : > { %v981_v49 = vadd.f32 %v979_v31, %v975_v30 }
 0x2f2   : > { %v983_v42 = vsel %vm2755_vm8, %v981_v49, %v979_v31 }
 0x2f4   : > { %v2015_v37 = vpop.eup %2014 }
 0x2f5   : > { %v968_v26 = vmul.f32 %v2015_v37, %v954_v50 }
 0x2f7   : > { %v974_v34 = vmul.f32 %v973_v61, %v968_v26  ;;  %v1436_v39 = vpop.xlane.xlu0 %1435 }
 0x2f8   : > { %v1443_v40 = vmul.f32 0.0078125, %v1436_v39 }
 0x2f9   : > { %v980_v44 = vadd.f32 %v979_v31, %v974_v34  ;;  %v1438_v41 = vpop.xlane.xlu1 %1437 }
 0x2fa   : > { %v1444_v47 = vmul.f32 0.0078125, %v1438_v41  ;;  %v1447_v28 = vadd.f32 1e-05, %v1443_v40 }
 0x2fb   : > { %v1440_v33 = vpop.xlane.xlu0 %1439  ;;  %v982_v48 = vsel %vm2729_vm7, %v980_v44, %v979_v31 }
 0x2fc   : > { %v1448_v5 = vadd.f32 1e-05, %v1444_v47  ;;  %2016 = vrsqrt.f32 %v1447_v28  ;;  %v1445_v50 = vmul.f32 0.0078125, %v1440_v33  ;;  %v1824_v52 = vpack.c.bf16 %v983_v42, %v982_v48 }
 0x2fd   : > { %v1442_v54 = vpop.xlane.xlu1 %1441 }
 0x2fe   : > { %2018 = vrsqrt.f32 %v1448_v5  ;;  %v1446_v15 = vmul.f32 0.0078125, %v1442_v54  ;;  %v1449_v38 = vadd.f32 1e-05, %v1445_v50  ;;  %1825 = vst [vmem:[%s506_s24] sm:$0xff] %v1824_v52  }
 0x2ff   : > { %2191 = shalt.err (!%p2188_p0)
}
 0x300   : > { %s2192_s15 = scalar_lea.hbm %s2945_s12, 128  ;;  %s2196_s22 = scalar_lea.hbm %s3132_s19, 256 }
 0x301   : > { %p2193_p5 = scmp.ne.s32.totalorder %s2945_s12, %s2192_s15  ;;  %p2197_p9 = scmp.lt.u32.totalorder %s2945_s12, %s3132_s19 }
 0x302   : > { %p2198_p13 = scmp.lt.u32.totalorder %s2196_s22, %s2192_s15  ;;  %p2200_p10 = scmp.lt.u32.totalorder %s2192_s15, %s2945_s12 }
 0x303   : > { %p2194_p2 = pnand %p2193_p5, %p2571_p1 }
 0x304   : > { %p2199_p8 = por %p2198_p13, %p2197_p9 }
 0x305   : > { %p2195_p11 = pneg %p2194_p2 }
 0x306   : > { %p2201_p12 = por %p2200_p10, %p2199_p8 }
 0x308   : > { %p2202_p3 = pnand %p2201_p12, %p2195_p11 }
 0x30a   : > { %2205 = shalt.err (!%p2202_p3)
}
 0x30b   : > { %s2329_s23 = smov 64   ;;  %s2330_s30 = smov 4   ;;  %v1450_v23 = vadd.f32 1e-05, %v1446_v15  ;;  %2020 = vrsqrt.f32 %v1449_v38 }
 0x30c   : > { %1908 = dma.vmem_to_hbm [thread:$0]  (%p2571_p1), %s2947_s17, 128, %s2945_s12, %s2956_s18, %s2329_s23, %s2329_s23, %s2330_s30  }
 0x30d   : > { %s2206_s15 = scalar_lea.vmem %s2954_s20, 64  ;;  %s2331_s24 = smov [#allocation16]  }
 0x30e   : > { %p2207_p6 = scmp.ne.s32.totalorder %s2954_s20, %s2206_s15  ;;  %s2210_s10 = sshll.u32 %s2331_s24, 4  ;;  %s2211_s10 = int_to_ptr.vmem [resolvable:$false] %s2210_s10 }
 0x30f   : > { %s2212_s22 = scalar_lea.vmem %s2211_s10, 128  ;;  %p2213_p0 = scmp.lt.s32.totalorder %s2954_s20, %s2211_s10 }
 0x310   : > { %p2208_p7 = pnand %p2207_p6, %p2571_p1  ;;  %p2214_p5 = scmp.lt.s32.totalorder %s2212_s22, %s2206_s15 }
 0x312   : > { %p2209_p4 = pneg %p2208_p7  ;;  %p2215_p2 = por %p2214_p5, %p2213_p0 }
 0x314   : > { %p2216_p11 = pnand %p2215_p2, %p2209_p4 }
 0x316   : > { %2219 = shalt.err (!%p2216_p11)
}
 0x317   : > { %s2220_s17 = scalar_lea.hbm %s2952_s21, 64  ;;  %s2224_s1 = scalar_lea.hbm %s3133_s13, 128 }
 0x318   : > { %p2221_p9 = scmp.ne.s32.totalorder %s2952_s21, %s2220_s17  ;;  %p2225_p10 = scmp.lt.u32.totalorder %s2952_s21, %s3133_s13 }
 0x319   : > { %p2226_p12 = scmp.lt.u32.totalorder %s2224_s1, %s2220_s17  ;;  %p2228_p6 = scmp.lt.u32.totalorder %s2220_s17, %s2952_s21 }
 0x31a   : > { %p2222_p13 = pnand %p2221_p9, %p2571_p1 }
 0x31b   : > { %p2227_p3 = por %p2226_p12, %p2225_p10 }
 0x31c   : > { %p2223_p8 = pneg %p2222_p13 }
 0x31d   : > { %p2229_p7 = por %p2228_p6, %p2227_p3 }
 0x31f   : > { %p2230_p4 = pnand %p2229_p7, %p2223_p8 }
 0x321   : > { %2233 = shalt.err (!%p2230_p4)
}
 0x322   : > { %1909 = dma.vmem_to_hbm [thread:$0]  (%p2571_p1), %s2954_s20, 64, %s2952_s21, %s2956_s18   ;;  %2022 = vrsqrt.f32 %v1450_v23  ;;  %v2017_v55 = vpop.eup %2016  ;;  %v1462_v24 = vrot.slane %v2850_v32, %v2914_v51  ;;  %v1470_v36 = vrot.slane %v2850_v32, %v2917_v57 }
 0x323   : > { %v1455_v6 = vmul.f32 %v2017_v55, %v2897_v56  ;;  %v2019_v58 = vpop.eup %2018  ;;  %s1819_s21 = sshll.u32 %s2422_s29, 8  ;;  %s3134_s20 = sshll.u32 %s2626_s11, 4 }
 0x324   : > { %v1456_v60 = vmul.f32 %v2019_v58, %v2899_v29  ;;  %v2021_v21 = vpop.eup %2020  ;;  %s499_s18 = scalar_lea.vmem [#allocation13], %s3134_s20  ;;  %s3135_s12 = sld [smem:[#allocation26_spill]] }
 0x325   : > { %v1463_v59 = vmul.f32 %v1462_v24, %v1455_v6  ;;  %v1457_v1 = vmul.f32 %v2021_v21, %v2905_v62  ;;  %s1523_s15 = sshll.u32 %s499_s18, 4  ;;  %s1500_s29 = scalar_lea.sflag [#allocation6], %s2626_s11  ;;  %s3033_s15 = int_to_ptr.vmem [resolvable:$true] %s1523_s15 }
 0x326   : > { %v1464_v0 = vmul.f32 %v1462_v24, %v1456_v60  ;;  %s2234_s1 = scalar_lea.vmem %s3033_s15, 256  ;;  %s2332_s24 = smov [#allocation13]  }
 0x327   : > { %v1471_v63 = vadd.f32 %v1470_v36, %v1463_v59  ;;  %v1465_v4 = vmul.f32 %v1462_v24, %v1457_v1  ;;  %p2235_p0 = scmp.ne.s32.totalorder %s3033_s15, %s2234_s1  ;;  %s2238_s10 = sshll.u32 %s2332_s24, 4  ;;  %s2239_s10 = int_to_ptr.vmem [resolvable:$false] %s2238_s10 }
 0x328   : > { %v1472_v2 = vadd.f32 %v1470_v36, %v1464_v0  ;;  %s2240_s20 = scalar_lea.vmem %s2239_s10, 512  ;;  %p2241_p11 = scmp.lt.s32.totalorder %s3033_s15, %s2239_s10 }
 0x329   : > { %v1475_v56 = vsel %vm1084_vm10, %v1471_v63, %v1470_v36  ;;  %v1473_v29 = vadd.f32 %v1470_v36, %v1465_v4  ;;  %p2236_p5 = pnand %p2235_p0, %p2571_p1  ;;  %p2242_p9 = scmp.lt.s32.totalorder %s2240_s20, %s2234_s1 }
 0x32a   : > { %v1476_v57 = vsel %vm1085_vm14, %v1472_v2, %v1470_v36  ;;  %s3031_s16 = scalar_lea.hbm %s3135_s12, %s1819_s21 }
 0x32b   : > { %v1829_v7 = vpack.c.bf16 %v1476_v57, %v1475_v56  ;;  %v1477_v62 = vsel %vm1086_vm9, %v1473_v29, %v1470_v36  ;;  %p2237_p2 = pneg %p2236_p5  ;;  %p2243_p13 = por %p2242_p9, %p2241_p11 }
 0x32c   : > { %v2023_v3 = vpop.eup %2022 }
 0x32d   : > { %v1458_v51 = vmul.f32 %v2023_v3, %v2907_v10  ;;  %1830 = vst [vmem:[%s499_s18] sm:$0xff] %v1829_v7   ;;  %p2244_p8 = pnand %p2243_p13, %p2237_p2 }
 0x32f   : > { %v1466_v32 = vmul.f32 %v1462_v24, %v1458_v51 }
 0x331   : > { %v1474_v8 = vadd.f32 %v1470_v36, %v1466_v32 }
 0x333   : > { %v1478_v20 = vsel %vm1087_vm13, %v1474_v8, %v1470_v36 }
 0x334   : > { %v1834_v10 = vpack.c.bf16 %v1478_v20, %v1477_v62 }
 0x336   : > { %1836 = vst [vmem:[%s499_s18 + $0x8] sm:$0xff] %v1834_v10  }
 0x337   : > { %2247 = shalt.err (!%p2244_p8)
}
 0x338   : > { %s2248_s21 = scalar_lea.hbm %s3031_s16, 256  ;;  %s2252_s17 = scalar_lea.hbm %s3135_s12, 512 }
 0x339   : > { %p2249_p10 = scmp.ne.s32.totalorder %s3031_s16, %s2248_s21  ;;  %p2253_p6 = scmp.lt.u32.totalorder %s3031_s16, %s3135_s12 }
 0x33a   : > { %p2254_p7 = scmp.lt.u32.totalorder %s2252_s17, %s2248_s21  ;;  %p2256_p0 = scmp.lt.u32.totalorder %s2248_s21, %s3031_s16 }
 0x33b   : > { %p2250_p12 = pnand %p2249_p10, %p2571_p1 }
 0x33c   : > { %p2255_p4 = por %p2254_p7, %p2253_p6 }
 0x33d   : > { %p2251_p3 = pneg %p2250_p12 }
 0x33e   : > { %p2257_p5 = por %p2256_p0, %p2255_p4 }
 0x340   : > { %p2258_p2 = pnand %p2257_p5, %p2251_p3 }
 0x342   : > { %2261 = shalt.err (!%p2258_p2)
}
 0x343   : > { %1907 = dma.vmem_to_hbm [thread:$0]  (%p2571_p1), %s3033_s15, 256, %s3031_s16, %s1500_s29, %s2329_s23, %s2329_s23, %s2330_s30  }
 0x344 PF: > { %s3136_s1 = sld [smem:[#allocation23_spill]]  ;;  %s3137_s20 = sld [smem:[#allocation24_spill]] }
 0x345   : > { %p3139_p9 = scmp.ge.s32.totalorder %s2314_s28, 2 }
 0x34a   : > { %s1567_s18 = sand.u32 1, %s3136_s1   ;;  %p3138_p11 = scmp.ne.s32.totalorder %s3137_s20, 0 }
 0x34b   : > { %s1568_s21 = scalar_lea.sflag [#allocation6], %s1567_s18 }
 0x34c   : > { %p1931_p13 = pnand %p3139_p9, %p3138_p11 }
 0x34e   : > { %2293 = dma.done.wait (!%p1931_p13), %s1568_s21, 256  }
 0x34f   : > { %2295 = vsyncadd (!%p1931_p13), %s1568_s21, 4294967040  ;;  %s3140_s0 = sadd.s32 4294967294, %s2314_s28  }
 0x350   : > { %s1576_s22 = sand.u32 1, %s3140_s0  }
 0x351   : > { %s1577_s17 = scalar_lea.sflag [#allocation15], %s1576_s22 }
 0x352   : > { %2297 = dma.done.wait (!%p1931_p13), %s1577_s17, 192  }
 0x353   : > { %2299 = vsyncadd (!%p1931_p13), %s1577_s17, 4294967104  ;;  %p37_p1 = scmp.ge.s32.totalorder %s2561_s14, 4   ;;  %s3141_s0 = smov %s2306_s26 }
 0x354   : > { %s3142_s26 = smov %s2310_s27  ;;  %s3143_s27 = smov %s2577_s25 }
 0x355   : > { %s3144_s28 = smov %s2561_s14  ;;  %39 = sbr.rel (!%p37_p1) target bundleno = 26 (0x1a), region = 155 }
 0x35c   :  { %1591 = vsyncpa [#allocation5], 1 }
 0x35d   :  { %1593 = vsyncpa [#allocation5 + $0x1], 1 }
 0x35e   :  { %1594 = vsyncpa [#allocation8], 1 }
 0x35f   :  { %1595 = vsyncpa [#allocation11], 1 }
 0x360   :  { %1596 = vsyncpa [#allocation6], 1 }
 0x361   :  { %1598 = vsyncpa [#allocation6 + $0x1], 1 }
 0x362   :  { %1599 = vsyncpa [#allocation15], 1 }
 0x363   :  { %1601 = vsyncpa [#allocation15 + $0x1], 1 }

</bundles_post_ra>
